<compile_context>
chip_gen: v5e
topology: v5e:2x2
jax: 0.10.0
libtpu: 0.0.40
codegen_flags: <defaults>
</compile_context>

<pallas_src>
import functools
import math

import numpy as np
import jax
import jax.numpy as jnp
from jax import lax
from jax.experimental import pallas as pl
from jax.experimental.pallas import tpu as pltpu

EMBEDDING_DIM = 300
LANE = 128
MB = 8          # mentions per grid step in the attention-flow kernel


def _ceil_to(x, mult):
    return ((int(x) + mult - 1) // mult) * mult


# ---------------------------------------------------------------------------
# Kernel 1: char conv ([E, W] kernel) + max-pool over positions + bias + ReLU.
# One batch tile per grid step; the conv is W shifted bf16 matmuls (no im2col).
# ---------------------------------------------------------------------------
def _char_conv_kernel(x_ref, w_ref, b_ref, o_ref, *, W, Lout):
    xv = x_ref[...]                                        # (TB, L, E) bf16
    TB, _, E = xv.shape
    Cp = w_ref.shape[2]
    acc = jnp.zeros((TB * Lout, Cp), jnp.float32)
    for w in range(W):                                     # static, W is small
        xs = xv[:, w:w + Lout, :].reshape(TB * Lout, E)
        acc = acc + jnp.dot(xs, w_ref[w], preferred_element_type=jnp.float32)
    pooled = jnp.max(acc.reshape(TB, Lout, Cp), axis=1)    # max-pool over positions
    o_ref[...] = jnp.maximum(pooled + b_ref[...], 0.0)     # bias + ReLU after pool


def char_conv_pool(x, conv_w_p, conv_b_p, W):
    """x: (B, L, E) f32; conv_w_p: (W, E, Cp) bf16; conv_b_p: (1, Cp) -> (B, Cp) f32."""
    B, L, E = x.shape
    Lout = L - W + 1
    Cp = conv_w_p.shape[2]
    Bp8 = _ceil_to(max(B, 8), 8)
    TB = min(128, Bp8)
    Bp = _ceil_to(Bp8, TB)
    xp = jnp.pad(x, ((0, Bp - B), (0, 0), (0, 0))).astype(jnp.bfloat16)
    kern = functools.partial(_char_conv_kernel, W=W, Lout=Lout)
    out = pl.pallas_call(
        kern,
        grid=(Bp // TB,),
        in_specs=[pl.BlockSpec((TB, L, E), lambda i: (i, 0, 0)),
                  pl.BlockSpec((W, E, Cp), lambda i: (0, 0, 0)),
                  pl.BlockSpec((1, Cp), lambda i: (0, 0))],
        out_specs=pl.BlockSpec((TB, Cp), lambda i: (i, 0)),
        out_shape=jax.ShapeDtypeStruct((Bp, Cp), jnp.float32),
        compiler_params=pltpu.CompilerParams(dimension_semantics=("parallel",)),
    )(xp, conv_w_p, conv_b_p)
    return out[:B]


# ---------------------------------------------------------------------------
# Kernel 2 (grid over mention blocks of MB): "LSTM" projection + BiDAF
# attention-flow + linear_z + ReLU + layer_local_combine1 + per-mention score
# normalisations.  Candidate title rows are gathered in-kernel (scalar-
# prefetched indices); output is per-candidate (MB, CM, 4).
# ---------------------------------------------------------------------------
def _attflow_kernel(cid_ref, title_ref, mchar_ref, ss_ref, qmask_ref,
                    wl_ref, bl_ref, watt_ref, wz_ref, wcomb_ref, scal_ref,
                    o_ref, gath_ref, *, MBk, CM):
    blk = pl.program_id(0)
    Hp = wl_ref.shape[1]
    neg = jnp.float32(-1e30)

    # ---- in-kernel gather of candidate title rows (title table is VMEM-resident)
    base = blk * (MBk * CM)
    for t in range(MBk * CM):                               # static; CM is small
        idx = cid_ref[base + t]
        gath_ref[pl.ds(t, 1), :] = title_ref[pl.ds(idx, 1), :]

    tchar = gath_ref[...].astype(jnp.bfloat16)              # (MB*CM, Cp)
    mchar = mchar_ref[...].astype(jnp.bfloat16)             # (MB, Cp)

    bc, bq, bcq = scal_ref[0], scal_ref[1], scal_ref[2]
    bz, bcomb, wcomb_p = scal_ref[3], scal_ref[4], scal_ref[5]

    wl = wl_ref[...]                                        # (Cp, Hp) bf16
    bl = bl_ref[...]                                        # (1, Hp) f32

    # TODO(synk): context_LSTM stand-in - per-position tanh projection (C -> H).
    c_flat = jnp.tanh(jnp.dot(tchar, wl, preferred_element_type=jnp.float32) + bl)
    qrow = jnp.tanh(jnp.dot(mchar, wl, preferred_element_type=jnp.float32) + bl)
    c = c_flat.reshape(MBk, CM, Hp)                         # (MB, CM, Hp)
    q = jnp.broadcast_to(qrow[:, None, :], (MBk, CM, Hp))

    watt = watt_ref[...]
    wc_row, wq_row, wcq_row = watt[0:1, :], watt[1:2, :], watt[2:3, :]
    dn_hh = (((2,), (2,)), ((0,), (0,)))                    # contract Hp, batch MB
    dn_cq = (((2,), (1,)), ((0,), (0,)))                    # contract candidates

    qmask = qmask_ref[...]                                  # (MB, 1, CM)

    s_c = jnp.sum(c * wc_row, axis=2, keepdims=True) + bc                  # (MB,CM,1)
    wq_b = jnp.broadcast_to(wq_row[None, :, :], (MBk, 1, Hp))
    s_q = lax.dot_general(wq_b, q, dn_hh,
                          preferred_element_type=jnp.float32) + bq         # (MB,1,CM)
    cq = lax.dot_general(c * wcq_row, q, dn_hh,
                         preferred_element_type=jnp.float32) + bcq         # (MB,CM,CM)
    s = s_c + s_q + cq

    # c2q attention: masked softmax over candidate (q) columns
    s_msk = jnp.where(qmask > 0, s, neg)
    s_max = jnp.max(s_msk, axis=2, keepdims=True)
    e = jnp.exp(s_msk - s_max) * qmask
    a = e * pl.reciprocal(jnp.sum(e, axis=2, keepdims=True), approx=True)
    c2q = lax.dot_general(a, q, dn_cq, preferred_element_type=jnp.float32)  # (MB,CM,Hp)

    # valid-row mask (candidates packed at the front of each mention)
    candi = jnp.sum(qmask, axis=2, keepdims=True)                           # (MB,1,1)
    ridx = lax.broadcasted_iota(jnp.int32, (MBk, CM, 1), 1).astype(jnp.float32)
    cmask = (ridx < candi).astype(jnp.float32)                              # (MB,CM,1)

    # q2c attention: masked softmax over c rows
    rmax = jnp.where(cmask > 0, s_max, neg)
    mmax = jnp.max(rmax, axis=1, keepdims=True)
    be = jnp.exp(rmax - mmax) * cmask
    b_w = be * pl.reciprocal(jnp.sum(be, axis=1, keepdims=True), approx=True)
    q2c = jnp.sum(b_w * c, axis=1, keepdims=True)                           # (MB,1,Hp)

    # linear_z over [c, c2q, c*c2q, c*q2c]: VPU multiply + lane reduce
    wz = wz_ref[...]
    z = c * wz[0:1, :] + c2q * wz[1:2, :] + (c * c2q) * wz[2:3, :] + (c * q2c) * wz[3:4, :]
    p1f = jnp.maximum(jnp.sum(z, axis=2, keepdims=True) + bz, 0.0)          # (MB,CM,1)

    # layer_local_combine1 over [sense_feats, p1f]
    t = (jnp.sum(ss_ref[...] * wcomb_ref[...], axis=2, keepdims=True)
         + p1f * wcomb_p + bcomb)                                           # (MB,CM,1)

    # per-mention score normalisations (masked to the valid candidate rows)
    is_single = candi < 1.5
    mean = jnp.sum(t * cmask, axis=1, keepdims=True) / candi
    diff = (t - mean) * cmask
    var = jnp.sum(diff * diff, axis=1, keepdims=True) / jnp.maximum(candi - 1.0, 1.0)
    norm = (t - mean) / jnp.sqrt(var)
    soft_pre = jnp.where(is_single, t, norm)
    temp = soft_pre
    tmin = jnp.min(jnp.where(cmask > 0, t, jnp.float32(1e30)), axis=1, keepdims=True)
    tmax = jnp.max(jnp.where(cmask > 0, t, neg), axis=1, keepdims=True)
    unif_pre = jnp.where(is_single, t, (t + 1.0 - tmin) / (tmax - tmin))

    # sloppyMathLogSum + exp
    sp_m = jnp.where(cmask > 0, soft_pre, neg)
    mx = jnp.max(sp_m, axis=1, keepdims=True)
    lse = jnp.log(jnp.sum(jnp.exp(sp_m - mx) * cmask, axis=1, keepdims=True)) + mx
    soft = jnp.exp(soft_pre - lse)

    # softmax_layer(soft) / uniform normalisation (exact division: output path)
    sm = jnp.where(cmask > 0, soft, neg)
    smax = jnp.max(sm, axis=1, keepdims=True)
    es = jnp.exp(sm - smax) * cmask
    soft_s = es / jnp.sum(es, axis=1, keepdims=True)
    unif = unif_pre / jnp.sum(unif_pre * cmask, axis=1, keepdims=True)

    out = jnp.concatenate([temp, soft, unif, soft_s], axis=2) * cmask       # (MB,CM,4)
    o_ref[...] = out


def attflow_batched(cand_idx_flat, title_char, mention_char, ss_g, qmask, pp, *, CM):
    n_ents, Cp = title_char.shape
    m_pad = mention_char.shape[0]
    Fp = ss_g.shape[2]
    Hp = pp["wl_p"].shape[1]
    mt = m_pad // MB
    kern = functools.partial(_attflow_kernel, MBk=MB, CM=CM)
    gs = pltpu.PrefetchScalarGridSpec(
        num_scalar_prefetch=1,
        grid=(mt,),
        in_specs=[
            pl.BlockSpec((n_ents, Cp), lambda i, c: (0, 0)),      # title chars (resident)
            pl.BlockSpec((MB, Cp), lambda i, c: (i, 0)),          # mention chars
            pl.BlockSpec((MB, CM, Fp), lambda i, c: (i, 0, 0)),   # sense features
            pl.BlockSpec((MB, 1, CM), lambda i, c: (i, 0, 0)),    # candidate mask
            pl.BlockSpec((Cp, Hp), lambda i, c: (0, 0)),          # wl   (resident)
            pl.BlockSpec((1, Hp), lambda i, c: (0, 0)),           # bl
            pl.BlockSpec((8, Hp), lambda i, c: (0, 0)),           # att weights
            pl.BlockSpec((8, Hp), lambda i, c: (0, 0)),           # linear_z weights
            pl.BlockSpec((1, Fp), lambda i, c: (0, 0)),           # combine weights
            pl.BlockSpec(memory_space=pltpu.MemorySpace.SMEM),    # packed scalar biases
        ],
        out_specs=pl.BlockSpec((MB, CM, 4), lambda i, c: (i, 0, 0)),
        scratch_shapes=[pltpu.VMEM((MB * CM, Cp), jnp.float32)],
    )
    return pl.pallas_call(
        kern, grid_spec=gs,
        out_shape=jax.ShapeDtypeStruct((m_pad, CM, 4), jnp.float32),
        compiler_params=pltpu.CompilerParams(dimension_semantics=("parallel",)),
    )(cand_idx_flat, title_char, mention_char, ss_g, qmask,
      pp["wl_p"], pp["bl_p"], pp["watt_p"], pp["wz_p"], pp["wcombT"], pp["scal"])


# ---------------------------------------------------------------------------
# Kernel 3: global PageRank-style power iteration + mention_entity masking +
# global_softmax.  SR / e2e are streamed as row tiles; g lives in VMEM scratch.
# ---------------------------------------------------------------------------
def _global_kernel(s_ref, sr_ref, e2e_ref, me_ref, gsm_ref, gsc_ref,
                   gcol_ref, acc_ref, *, lamda, K, NR):
    k = pl.program_id(0)
    r = pl.program_id(1)

    @pl.when(jnp.logical_and(k == 0, r == 0))
    def _():
        gcol_ref[...] = jnp.transpose(s_ref[...]).reshape(gcol_ref.shape)

    @pl.when(r == 0)
    def _():
        acc_ref[...] = jnp.zeros_like(acc_ref)

    gseg = gcol_ref[r]                                       # (TR, 1): rows of g

    @pl.when(k < K)
    def _():
        acc_ref[...] += jnp.sum(gseg * sr_ref[...], axis=0, keepdims=True)

    @pl.when(jnp.logical_and(k < K, r == NR - 1))
    def _():
        g_new = (1.0 - lamda) * acc_ref[...] + lamda * s_ref[...]
        gcol_ref[...] = jnp.transpose(g_new).reshape(gcol_ref.shape)

    @pl.when(k == K)
    def _():
        acc_ref[...] += jnp.sum(gseg * e2e_ref[...], axis=0, keepdims=True)

    @pl.when(jnp.logical_and(k == K, r == NR - 1))
    def _():
        g_row = jnp.transpose(gcol_ref[...].reshape(-1, 1))  # (1, n_pad)
        gsm_ref[...] = g_row / acc_ref[...]                  # exact division
        gsc_ref[...] = me_ref[...] * g_row


def global_power(ls, SR, me, e2e, lamda, K):
    m_, n_ = ls.shape
    n_pad = max(LANE, _ceil_to(n_, LANE))
    # keep each streamed (TR, n_pad) block small enough for v5e's 16 MiB default
    tr_cap = max(8, (2 * 1024 * 1024) // (4 * n_pad))
    TR = n_pad
    while TR > tr_cap and TR % 16 == 0:
        TR //= 2
    NR = n_pad // TR
    K = int(K)

    s = jnp.sum(ls, axis=0, keepdims=True)                   # ones(1,m) @ local_score
    pad_n = n_pad - n_
    s_p = jnp.pad(s, ((0, 0), (0, pad_n)))
    SR_p = jnp.pad(SR, ((0, pad_n), (0, pad_n)))
    e2e_p = jnp.pad(e2e, ((0, pad_n), (0, pad_n)))
    me_p = jnp.pad(me, ((0, 0), (0, pad_n)))

    kern = functools.partial(_global_kernel, lamda=float(lamda), K=K, NR=NR)
    gsm, gsc = pl.pallas_call(
        kern,
        grid=(K + 1, NR),
        in_specs=[
            pl.BlockSpec((1, n_pad), lambda k, r: (0, 0)),                        # s
            pl.BlockSpec((TR, n_pad), lambda k, r: (jnp.where(k < K, r, 0), 0)),  # SR tiles
            pl.BlockSpec((TR, n_pad), lambda k, r: (jnp.where(k == K, r, 0), 0)), # e2e tiles
            pl.BlockSpec((m_, n_pad), lambda k, r: (0, 0)),                       # mention_entity
        ],
        out_specs=(pl.BlockSpec((1, n_pad), lambda k, r: (0, 0)),
                   pl.BlockSpec((m_, n_pad), lambda k, r: (0, 0))),
        out_shape=(jax.ShapeDtypeStruct((1, n_pad), jnp.float32),
                   jax.ShapeDtypeStruct((m_, n_pad), jnp.float32)),
        scratch_shapes=[pltpu.VMEM((NR, TR, 1), jnp.float32),
                        pltpu.VMEM((1, n_pad), jnp.float32)],
        compiler_params=pltpu.CompilerParams(
            dimension_semantics=("arbitrary", "arbitrary")),
    )(s_p, SR_p, e2e_p, me_p)
    return s, gsm[:, :n_], gsc[:, :n_]


# ---------------------------------------------------------------------------
# Parameter preparation: lane-dense padding (channels/H -> 128), bf16 casts
# for the MXU-feeding weights, packed scalar biases.
# ---------------------------------------------------------------------------
def prepare_params(params):
    W, E, C = params["conv_w"].shape
    Cp = max(LANE, _ceil_to(C, LANE))
    conv_w_p = jnp.pad(params["conv_w"], ((0, 0), (0, 0), (0, Cp - C))).astype(jnp.bfloat16)
    conv_b_p = jnp.pad(params["conv_b"], ((0, 0), (0, Cp - C)))
    H = params["wl"].shape[1]
    Hp = max(LANE, _ceil_to(H, LANE))
    wl_p = jnp.pad(params["wl"], ((0, Cp - C), (0, Hp - H))).astype(jnp.bfloat16)
    bl_p = jnp.pad(params["bl"], ((0, 0), (0, Hp - H)))
    watt_p = jnp.pad(params["watt"], ((0, 8 - 3), (0, Hp - H)))
    wz_p = jnp.pad(params["wz"].reshape(4, H), ((0, 8 - 4), (0, Hp - H)))
    F = params["wcomb"].shape[0] - 1
    Fp = _ceil_to(F, LANE)
    wcombT = jnp.pad(params["wcomb"][:F, 0].reshape(1, F), ((0, 0), (0, Fp - F)))
    wcomb_p = params["wcomb"][F, 0]
    scal = jnp.concatenate([params["batt"].reshape(-1),
                            params["bz"].reshape(-1),
                            params["bcomb"].reshape(-1),
                            jnp.reshape(wcomb_p, (1,)),
                            jnp.zeros((2,), jnp.float32)])     # (8,)
    pp = dict(params)
    pp.update(conv_w_p=conv_w_p, conv_b_p=conv_b_p, wl_p=wl_p, bl_p=bl_p,
              watt_p=watt_p, wz_p=wz_p, wcombT=wcombT, scal=scal,
              W=W, Cp=Cp, Hp=Hp, Fp=Fp)
    return pp


# ---------------------------------------------------------------------------
# Glue: embedding lookup, candidate packing (host), JAX scatter of per-candidate
# scores into entity columns, data-dependent SR preprocessing (numpy).
# ---------------------------------------------------------------------------
def local_score_fn(pp, batch):
    emb = pp["char_emb"]
    title2vec = emb[batch["title_vec"]]           # (n, Lt, E)
    mention2vec = emb[batch["mention_vec"]]       # (m, Lm, E)
    n, m = batch["n"], batch["m"]
    me = np.asarray(batch["mention_entity"])

    # char conv + pool for ALL entities / mentions: single tiled pallas_call
    if title2vec.shape[1] == mention2vec.shape[1]:
        allchar = char_conv_pool(jnp.concatenate([title2vec, mention2vec], axis=0),
                                 pp["conv_w_p"], pp["conv_b_p"], pp["W"])
        title_char, mention_char = allchar[:n], allchar[n:n + m]
    else:
        title_char = char_conv_pool(title2vec, pp["conv_w_p"], pp["conv_b_p"], pp["W"])
        mention_char = char_conv_pool(mention2vec, pp["conv_w_p"], pp["conv_b_p"], pp["W"])

    # candidate packing (data-dependent structure, stays on host)
    cand_lists = [[j for j in range(n) if int(me[i, j]) == 1] for i in range(m)]
    cmax = max(1, max(len(cl) for cl in cand_lists))
    CM = max(8, int(2 ** math.ceil(math.log2(cmax))))       # pow2 pad limits recompiles
    m_pad = _ceil_to(m, MB)
    cand_idx = np.zeros((m_pad, CM), np.int32)
    qmask = np.zeros((m_pad, 1, CM), np.float32)
    qmask[m:, 0, 0] = 1.0                                    # padded mentions: 1 fake cand
    pos_embed = []
    for i, cl in enumerate(cand_lists):
        for k, j in enumerate(cl):
            cand_idx[i, k] = j
            qmask[i, 0, k] = 1.0
        pos_embed += [batch["pos_embed_dict"][i]] * len(cl)

    idx = jnp.asarray(cand_idx[:m])                          # (m, CM)
    sf = batch["sfeats"]
    F = sf.shape[-1]
    ss_g = jnp.take_along_axis(sf, idx[:, :, None], axis=1)  # (m, CM, F)
    ss_g = jnp.pad(ss_g, ((0, m_pad - m), (0, 0), (0, pp["Fp"] - F)))
    mchar_p = jnp.pad(mention_char, ((0, m_pad - m), (0, 0)))

    out = attflow_batched(jnp.asarray(cand_idx.reshape(-1)), title_char, mchar_p,
                          ss_g, jnp.asarray(qmask), pp, CM=CM)    # (m_pad, CM, 4)
    vals = out[:m]
    rows = jnp.arange(m)[:, None]

    def scatter(v):                                          # (m, CM) -> (m, n)
        return jnp.zeros((m, n), jnp.float32).at[rows, idx].add(v)

    temp = scatter(vals[:, :, 0])
    soft = scatter(vals[:, :, 1])
    unif = scatter(vals[:, :, 2])
    soft_s = scatter(vals[:, :, 3])
    return temp, soft, unif, pos_embed, soft_s


def global_score_fn(batch, local_score_norm, random_k, lamda, flag, pos_embed, entity_embed):
    n, m = batch["n"], batch["m"]
    SR = np.array(batch["SR"], np.float32).copy()
    mention_entity = np.asarray(batch["mention_entity"], np.float32)
    entity_entity = np.asarray(batch["entity_entity"], np.float32)
    flag_entity = int(flag.split(":")[0])
    flag_sr = int(flag.split(":")[1])

    ee = np.asarray(entity_embed, np.float32)
    pe = np.stack([np.asarray(p, np.float32) for p in pos_embed], 0)
    ce = ee + pe

    def cos_mat(a):
        nrm = np.sqrt((a * a).sum(-1))
        return (a @ a.T) / (nrm[:, None] * nrm[None, :])

    entity_dis = cos_mat(ee)
    combine_dis = cos_mat(ce)

    ls_np = np.asarray(local_score_norm)
    candidate = []
    for i in range(m):
        candidate += [int(j) for j in np.argsort(-ls_np[i])[:flag_entity]]

    cand_cols = np.zeros(n, bool)
    cand_cols[np.array(sorted(set(candidate)), np.int32)] = True
    keep = (entity_entity.astype(int) != 0) & cand_cols[None, :]
    SR = np.where(keep, SR, 0.0)
    e2e_mask = np.where(entity_entity.astype(int) == 1, 0.0, 1.0).astype(np.float32)
    SR = np.where(np.abs(SR) < 1e-6, SR, np.exp(SR * 10.0))

    if flag_sr == 1:
        entity_dis = np.where(np.abs(SR) < 1e-6, 0.0, entity_dis)
        SR = SR + entity_dis
    if flag_sr == 2:
        combine_dis = np.where(np.abs(SR) < 1e-6, 0.0, combine_dis)
        SR = SR + combine_dis
    if flag_sr == 3:
        combine_dis = np.where(np.abs(SR) < 1e-6, 0.0, combine_dis)
        SR = combine_dis
    if flag_sr == 4:
        SR = np.random.RandomState(0).rand(n, n).astype(np.float32)

    rs = SR.sum(axis=1, keepdims=True)
    SR = np.where(np.abs(rs) < 1e-6, SR, SR / np.where(np.abs(rs) < 1e-6, 1.0, rs))

    s, fai_global, global_sc = global_power(
        jnp.asarray(ls_np, jnp.float32), jnp.asarray(SR, jnp.float32),
        jnp.asarray(mention_entity, jnp.float32), jnp.asarray(e2e_mask, jnp.float32),
        lamda, random_k)
    return s, fai_global, global_sc


def fai_score_forward(params, batch, random_k, lamda, flag):
    pp = prepare_params(params)
    (fai_local, fai_local_soft, _fai_local_unif,
     pos_embed, _fai_local_soft_s) = local_score_fn(pp, batch)
    s, fai_global, global_sc = global_score_fn(
        batch, fai_local_soft, random_k, lamda, flag, pos_embed, batch["entity_embed_dict"])
    return s, fai_global, fai_local, fai_local_soft, global_sc


# ---------------------------------------------------------------------------
if __name__ == "__main__":
    H = 16          # args.hidden_size
    C = 32          # args.char_channel_size (= 2*H)
    W = 3           # args.char_channel_width
    n, m = 8, 2     # entities, mentions
    Lt, Lm = 8, 8   # title / mention char lengths
    F_IND = 623     # num_indicator_features
    D_POS = 16
    random_k, lamda, flag = 3, 0.3, "2:0"

    key = jax.random.PRNGKey(0)
    ks = jax.random.split(key, 16)

    char_emb = jax.random.uniform(ks[0], (5053, EMBEDDING_DIM), jnp.float32, -0.001, 0.001)
    char_emb = char_emb.at[1].set(0.0)   # padding_idx=1

    params = {
        "char_emb": char_emb,
        "conv_w": jax.random.normal(ks[1], (W, EMBEDDING_DIM, C), jnp.float32) * 0.05,
        "conv_b": jax.random.normal(ks[2], (1, C), jnp.float32) * 0.01,
        "wl": jax.random.normal(ks[3], (C, H), jnp.float32) * 0.1,
        "bl": jnp.zeros((1, H), jnp.float32),
        "watt": jax.random.normal(ks[4], (3, H), jnp.float32) * 0.1,
        "batt": jnp.zeros((1, 3), jnp.float32),
        "wz": jax.random.normal(ks[5], (4 * H, 1), jnp.float32) * 0.1,
        "bz": jnp.zeros((1, 1), jnp.float32),
        "wcomb": jax.random.normal(ks[6], (F_IND + 1, 1), jnp.float32) * 0.05,
        "bcomb": jnp.zeros((1, 1), jnp.float32),
    }

    mention_entity = np.zeros((m, n), np.float32)
    mention_entity[0, :4] = 1.0
    mention_entity[1, 4:] = 1.0
    entity_entity = np.array([[1 if (i + j) % 3 == 0 else 0 for j in range(n)]
                              for i in range(n)], np.float32)

    batch = {
        "n": n, "m": m,
        "title_vec": jax.random.randint(ks[7], (n, Lt), 2, 200),
        "mention_vec": jax.random.randint(ks[8], (m, Lm), 2, 200),
        "sfeats": jax.random.normal(ks[9], (m, n, F_IND), jnp.float32) * 0.1,
        "mention_entity": mention_entity,
        "entity_entity": entity_entity,
        "SR": np.asarray(jax.random.uniform(ks[10], (n, n), jnp.float32)),
        "pos_embed_dict": [jax.random.normal(ks[11], (D_POS,), jnp.float32),
                           jax.random.normal(ks[12], (D_POS,), jnp.float32)],
        "entity_embed_dict": jax.random.normal(ks[13], (n, D_POS), jnp.float32),
    }

    s, fai_global, fai_local, fai_local_soft, global_sc = fai_score_forward(
        params, batch, random_k, lamda, flag)
    for out in (s, fai_global, fai_local, fai_local_soft, global_sc):
        jax.block_until_ready(out)
    print("KERNEL_OK")
</pallas_src>

<mosaic_0001>
module attributes {stable_mosaic.version = 11 : i64} {
  func.func @_char_conv_kernel(%arg0: i32, %arg1: memref<16x8x300xbf16, #tpu.memory_space<vmem>>, %arg2: memref<3x300x128xbf16, #tpu.memory_space<vmem>>, %arg3: memref<1x128xf32, #tpu.memory_space<vmem>>, %arg4: memref<16x128xf32, #tpu.memory_space<vmem>>) attributes {dimension_semantics = [#tpu.dimension_semantics<parallel>], iteration_bounds = array<i64: 1>, scalar_prefetch = 0 : i64, scratch_operands = 0 : i64, tpu.core_type = #tpu.core_type<tc>, window_params = [{transform_indices = @transform_0, window_bounds = array<i64: 16, 8, 300>}, {pipeline_mode = #tpu.pipeline_mode<synchronous>, transform_indices = @transform_1, window_bounds = array<i64: 3, 300, 128>}, {pipeline_mode = #tpu.pipeline_mode<synchronous>, transform_indices = @transform_2, window_bounds = array<i64: 1, 128>}, {transform_indices = @transform_3, window_bounds = array<i64: 16, 128>}]} {
    %c0 = arith.constant 0 : index
    %c0_0 = arith.constant 0 : index
    %c0_1 = arith.constant 0 : index
    %0 = vector.load %arg1[%c0, %c0_0, %c0_1] : memref<16x8x300xbf16, #tpu.memory_space<vmem>>, vector<16x8x300xbf16>
    %cst = arith.constant 0.000000e+00 : f32
    %1 = vector.broadcast %cst : f32 to vector<96x128xf32>
    %2 = vector.extract_strided_slice %0 {offsets = [0, 0, 0], sizes = [16, 6, 300], strides = [1, 1, 1]} : vector<16x8x300xbf16> to vector<16x6x300xbf16>
    %3 = vector.shape_cast %2 : vector<16x6x300xbf16> to vector<96x300xbf16>
    %c0_2 = arith.constant 0 : index
    %c0_3 = arith.constant 0 : index
    %c0_4 = arith.constant 0 : index
    %4 = vector.load %arg2[%c0_2, %c0_3, %c0_4] : memref<3x300x128xbf16, #tpu.memory_space<vmem>>, vector<1x300x128xbf16>
    %5 = vector.shape_cast %4 : vector<1x300x128xbf16> to vector<300x128xbf16>
    %cst_5 = arith.constant dense<0.000000e+00> : vector<96x128xf32>
    %6 = tpu.matmul %3, %5, %cst_5 {dimension_numbers = #tpu.dot_dimension_numbers<[1], [0], [0], [1], [0, 0, 1, 1], [], []>} : vector<96x300xbf16>, vector<300x128xbf16>, vector<96x128xf32> -> vector<96x128xf32>
    %7 = arith.addf %1, %6 : vector<96x128xf32>
    %8 = vector.extract_strided_slice %0 {offsets = [0, 1, 0], sizes = [16, 6, 300], strides = [1, 1, 1]} : vector<16x8x300xbf16> to vector<16x6x300xbf16>
    %9 = vector.shape_cast %8 : vector<16x6x300xbf16> to vector<96x300xbf16>
    %c1 = arith.constant 1 : index
    %c0_6 = arith.constant 0 : index
    %c0_7 = arith.constant 0 : index
    %10 = vector.load %arg2[%c1, %c0_6, %c0_7] : memref<3x300x128xbf16, #tpu.memory_space<vmem>>, vector<1x300x128xbf16>
    %11 = vector.shape_cast %10 : vector<1x300x128xbf16> to vector<300x128xbf16>
    %cst_8 = arith.constant dense<0.000000e+00> : vector<96x128xf32>
    %12 = tpu.matmul %9, %11, %cst_8 {dimension_numbers = #tpu.dot_dimension_numbers<[1], [0], [0], [1], [0, 0, 1, 1], [], []>} : vector<96x300xbf16>, vector<300x128xbf16>, vector<96x128xf32> -> vector<96x128xf32>
    %13 = arith.addf %7, %12 : vector<96x128xf32>
    %14 = vector.extract_strided_slice %0 {offsets = [0, 2, 0], sizes = [16, 6, 300], strides = [1, 1, 1]} : vector<16x8x300xbf16> to vector<16x6x300xbf16>
    %15 = vector.shape_cast %14 : vector<16x6x300xbf16> to vector<96x300xbf16>
    %c2 = arith.constant 2 : index
    %c0_9 = arith.constant 0 : index
    %c0_10 = arith.constant 0 : index
    %16 = vector.load %arg2[%c2, %c0_9, %c0_10] : memref<3x300x128xbf16, #tpu.memory_space<vmem>>, vector<1x300x128xbf16>
    %17 = vector.shape_cast %16 : vector<1x300x128xbf16> to vector<300x128xbf16>
    %cst_11 = arith.constant dense<0.000000e+00> : vector<96x128xf32>
    %18 = tpu.matmul %15, %17, %cst_11 {dimension_numbers = #tpu.dot_dimension_numbers<[1], [0], [0], [1], [0, 0, 1, 1], [], []>} : vector<96x300xbf16>, vector<300x128xbf16>, vector<96x128xf32> -> vector<96x128xf32>
    %19 = arith.addf %13, %18 : vector<96x128xf32>
    %20 = vector.shape_cast %19 : vector<96x128xf32> to vector<16x6x128xf32>
    %cst_12 = arith.constant dense<0xFF800000> : vector<16x128xf32>
    %21 = vector.multi_reduction <maximumf>, %20, %cst_12 [1] : vector<16x6x128xf32> to vector<16x128xf32>
    %c0_13 = arith.constant 0 : index
    %c0_14 = arith.constant 0 : index
    %22 = vector.load %arg3[%c0_13, %c0_14] : memref<1x128xf32, #tpu.memory_space<vmem>>, vector<1x128xf32>
    %23 = vector.broadcast %22 : vector<1x128xf32> to vector<16x128xf32>
    %24 = arith.addf %21, %23 : vector<16x128xf32>
    %cst_15 = arith.constant 0.000000e+00 : f32
    %25 = vector.broadcast %cst_15 : f32 to vector<16x128xf32>
    %26 = arith.maximumf %24, %25 : vector<16x128xf32>
    %c0_16 = arith.constant 0 : index
    %c0_17 = arith.constant 0 : index
    %27 = vector.load %arg4[%c0_16, %c0_17] : memref<16x128xf32, #tpu.memory_space<vmem>>, vector<16x128xf32>
    tpu.vector_store %arg4[%c0_16, %c0_17], %26 {strides = array<i32>} : memref<16x128xf32, #tpu.memory_space<vmem>>, vector<16x128xf32>,
    return
  }
  func.func @transform_0(%arg0: i32) -> (i32, i32, i32) {
    %c0_i32 = arith.constant 0 : i32
    %c0_i32_0 = arith.constant 0 : i32
    %c0_i32_1 = arith.constant 0 : i32
    return %arg0, %c0_i32, %c0_i32_0 : i32, i32, i32
  }
  func.func @transform_1(%arg0: i32) -> (i32, i32, i32) {
    %c0_i32 = arith.constant 0 : i32
    %c0_i32_0 = arith.constant 0 : i32
    %c0_i32_1 = arith.constant 0 : i32
    %c0_i32_2 = arith.constant 0 : i32
    return %c0_i32, %c0_i32_0, %c0_i32_1 : i32, i32, i32
  }
  func.func @transform_2(%arg0: i32) -> (i32, i32) {
    %c0_i32 = arith.constant 0 : i32
    %c0_i32_0 = arith.constant 0 : i32
    %c0_i32_1 = arith.constant 0 : i32
    return %c0_i32, %c0_i32_0 : i32, i32
  }
  func.func @transform_3(%arg0: i32) -> (i32, i32) {
    %c0_i32 = arith.constant 0 : i32
    %c0_i32_0 = arith.constant 0 : i32
    return %arg0, %c0_i32 : i32, i32
  }
}

</mosaic_0001>

<bundles_post_ra>
// kernel: tpu_custom_call.1
= control target key start
LH: loop header
LB: loop body
LE: loop exit
PB: predicated region body
PF: predicated region fallthrough
CT: control target
= control target key end

     0   :  { %8 = vsyncpa [#allocation3], 0  ;;  %s4369_s0 = inlined_call_operand.hbm [shape: bf16[16,8,300], index: 0, kind: input, shape index: {}]   ;;  %s4370_s1 = inlined_call_operand.hbm [shape: bf16[3,300,128], index: 1, kind: input, shape index: {}]   ;;  %s4371_s2 = inlined_call_operand.vmem [shape: f32[1,128], index: 2, kind: input, shape index: {}]   ;;  %s4372_s3 = inlined_call_operand.hbm [shape: f32[16,128], index: 3, kind: output, shape index: {}]  }
   0x1   :  { %9 = vsyncpa [#allocation6], 0 }
   0x2   :  { %10 = vsyncpa [#allocation4], 0  ;;  %s15_s14 = sshll.u32 %s4369_s0, 4  ;;  %s2987_s15 = smov [#allocation2]   ;;  %s16_s14 = int_to_ptr.hbm [resolvable:$true] %s15_s14 }
   0x3   :  { %s17_s16 = sshll.u32 %s2987_s15, 4  ;;  %s28_s19 = sshll.u32 %s4370_s1, 4  ;;  %s18_s16 = int_to_ptr.vmem [resolvable:$true] %s17_s16  ;;  %s29_s19 = int_to_ptr.hbm [resolvable:$true] %s28_s19 }
   0x4   :  { %s2988_s20 = smov 192   ;;  %s2989_s21 = smov 12  }
   0x5   :  { %23 = dma.hbm_to_vmem [thread:$0]  %s16_s14, 3072, %s18_s16, [#allocation3], %s2988_s20, %s2988_s20, %s2989_s21  }
   0x6   :  { %s2990_s22 = smov [#allocation5]   ;;  %s2991_s24 = smov 64  }
   0x7   :  { %s30_s23 = sshll.u32 %s2990_s22, 4  ;;  %s2992_s25 = smov 4   ;;  %s31_s23 = int_to_ptr.vmem [resolvable:$true] %s30_s23 }
   0x8   :  { %36 = dma.hbm_to_vmem [thread:$0]  %s29_s19, 7296, %s31_s23, [#allocation6], %s2991_s24, %s2991_s24, %s2992_s25  }
   0x9   :  { %2981 = dma.done.wait [#allocation3], 3072  }
   0xa   :  { %2982 = vsyncadd [#allocation3], 4294964224 }
   0xb   :  { %2983 = dma.done.wait [#allocation6], 7296  }
   0xc   :  { %2984 = vsyncadd [#allocation6], 4294960000  ;;  %v2862_v0 = vld [vmem:[#allocation5 + $0xd0] sm:$0xff]  ;;  %v2861_v2 = vld [vmem:[#allocation5 + $0xc8] sm:$0xff]  ;;  %vm4373_vm0 = vcmask 1045504   ;;  %vm160_vm1 = vcmask 1040384  }
   0xd   :  { %v2870_v1 = vld [vmem:[#allocation5 + $0x110] sm:$0xff]  ;;  %1261 = vmatpush.bf16.msra.mxu0 %v2862_v0  ;;  %v2869_v3 = vld [vmem:[#allocation5 + $0x108] sm:$0xff]  ;;  %vm164_vm2 = vcmask 1042434   ;;  %v2860_v7 = vld [vmem:[#allocation5 + $0xc0] sm:$0xff]  ;;  %vm170_vm3 = vcmask 1041409   ;;  %vm172_vm4 = vcmask 1043459  }
   0xe   :  { %1300 = vmatpush.bf16.msra.mxu1 %v2870_v1  ;;  %v2664_v4 = vld [vmem:[#allocation5 + $0x128] sm:$0xf]  ;;  %v2873_v5 = vld [vmem:[#allocation5 + $0x128] sm:$0x30]  ;;  %vm174_vm5 = vcmask 1042433   ;;  %v2868_v8 = vld [vmem:[#allocation5 + $0x100] sm:$0xff] }
   0xf   :  { %v2665_v6 = vor.u32 %v2873_v5, %v2664_v4  ;;  %vm560_vm6 = vsmask.f32 256  ;;  %v3025_v10 = vld [vmem:[#allocation2] sm:$0xff]  ;;  %v3027_v11 = vld [vmem:[#allocation2 + $0x8] sm:$0xf]  ;;  %vm168_vm7 = vcmask 1041408  }
  0x10   :  { %4415 = vst [vmem:[#allocation11_spill] sm:$0xff] %v3025_v10  ;;  %vm179_vm8 = vcmask 1044484   ;;  %v3030_v12 = vld [vmem:[#allocation5 + $0x120] sm:$0xff]  ;;  %v3032_v13 = vld [vmem:[#allocation2 + $0xc] sm:$0xff]  ;;  %v3035_v14 = vrot.slane %v3025_v10, 3  ;;  %vm181_vm9 = vcmask 1043458  }
  0x11   :  { %1262 = vmatpush.bf16.msra.mxu0 %v2861_v2  ;;  %v3023_v9 = vsel %vm4373_vm0, %v2665_v6, 0  ;;  %4416 = vst [vmem:[#allocation12_spill] sm:$0xff] %v3027_v11  ;;  %vm561_vm10 = vsmask.f32 1284  ;;  %v2859_v15 = vld [vmem:[#allocation5 + $0xb8] sm:$0xff]  ;;  %v3044_v20 = vld [vmem:[#allocation2 + $0x24] sm:$0xff] }
  0x12   :  { %1301 = vmatpush.bf16.msra.mxu1 %v2869_v3  ;;  %2893 = vmatpush.bf16.msra.mxu2 %v3023_v9  ;;  %4417 = vst [vmem:[#allocation13_spill] sm:$0xff] %v3032_v13  ;;  %v2867_v16 = vld [vmem:[#allocation5 + $0xf8] sm:$0xff]  ;;  %v3038_v17 = vld [vmem:[#allocation2 + $0x14] sm:$0xf]  ;;  %vm563_vm11 = vsmask.f32 2312  ;;  %v163_v26 = vsel %vm160_vm1, %v3025_v10, %v3035_v14  ;;  %v171_v31 = vsel %vm170_vm3, %v3025_v10, %v3035_v14  ;;  %vm3120_vm14 = vmor %vm560_vm6, %vm561_vm10 }
  0x13   :  { %2894 = vmatpush.bf16.msra.mxu3 %v3023_v9  ;;  %4418 = vst [vmem:[#allocation14_spill] sm:$0xff] %v3038_v17  ;;  %v3040_v18 = vld [vmem:[#allocation2 + $0x18] sm:$0xff]  ;;  %v3042_v19 = vld [vmem:[#allocation2 + $0x20] sm:$0xf]  ;;  %v3047_v21 = vrot.slane %v3027_v11, 6  ;;  %v3050_v22 = vrot.slane %v3027_v11, 1  ;;  %v178_v32 = vsel %vm164_vm2, %v3025_v10, %v3035_v14  ;;  %vm3163_vm10 = vmor %vm3120_vm14, %vm563_vm11 }
  0x14   :  { %4419 = vst [vmem:[#allocation15_spill] sm:$0xff] %v3040_v18  ;;  %vm565_vm12 = vsmask.f32 3340  ;;  %v3052_v23 = vld [vmem:[#allocation2 + $0x2c] sm:$0xf]  ;;  %v3054_v24 = vld [vmem:[#allocation2 + $0x30] sm:$0xff] }
  0x15   :  { %4420 = vst [vmem:[#allocation16_spill] sm:$0xff] %v3042_v19  ;;  %1263 = vmatpush.bf16.msra.mxu0 %v2860_v7  ;;  %v3057_v25 = vrot.slane %v3032_v13, 3  ;;  %v3063_v27 = vld [vmem:[#allocation5 + $0x118] sm:$0xff]  ;;  %v3068_v29 = vrot.slane %v3038_v17, 6  ;;  %v3071_v30 = vrot.slane %v3038_v17, 1  ;;  %v3081_v33 = vrot.slane %v3040_v18, 3  ;;  %vm3198_vm14 = vmor %vm3163_vm10, %vm565_vm12 }
  0x16   :  { %4421 = vst [vmem:[#allocation17_spill] sm:$0xff] %v3044_v20  ;;  %1302 = vmatpush.bf16.msra.mxu1 %v2868_v8  ;;  %2895 = vmatpush.bf16.msra.mxu2 %v3030_v12  ;;  %v3065_v28 = vld [vmem:[#allocation2 + $0x38] sm:$0xf]  ;;  %v3084_v34 = vrot.slane %v3042_v19, 6  ;;  %v3087_v35 = vrot.slane %v3042_v19, 1  ;;  %v3090_v36 = vrot.slane %v3044_v20, 3  ;;  %v173_v42 = vsel %vm172_vm4, %v3047_v21, %v3050_v22 }
  0x17   :  { %4422 = vst [vmem:[#allocation18_spill] sm:$0xff] %v3052_v23  ;;  %2896 = vmatpush.bf16.msra.mxu3 %v3030_v12  ;;  %vm567_vm13 = vsmask.f32 4368  ;;  %v3092_v37 = vld [vmem:[#allocation2 + $0x3c] sm:$0xff]  ;;  %v3094_v38 = vld [vmem:[#allocation2 + $0x44] sm:$0xf]  ;;  %v167_v46 = vsel %vm164_vm2, %v3047_v21, %v3050_v22  ;;  %v175_v47 = vsel %vm174_vm5, %v171_v31, %v173_v42  ;;  %v180_v48 = vsel %vm179_vm8, %v3047_v21, %v3050_v22 }
  0x18   :  { %4423 = vst [vmem:[#allocation19_spill] sm:$0xff] %v3054_v24  ;;  %v3097_v39 = vrot.slane %v3052_v23, 6  ;;  %v3100_v40 = vrot.slane %v3052_v23, 1  ;;  %v3103_v41 = vrot.slane %v3054_v24, 3  ;;  %v2858_v43 = vld [vmem:[#allocation5 + $0xb0] sm:$0xff]  ;;  %v3109_v45 = vrot.slane %v3065_v28, 6  ;;  %vm3234_vm12 = vmor %vm3198_vm14, %vm567_vm13 }
  0x19   :  { %4424 = vst [vmem:[#allocation20_spill] sm:$0xff] %v3065_v28  ;;  %1264 = vmatpush.bf16.msra.mxu0 %v2859_v15  ;;  %v2866_v44 = vld [vmem:[#allocation5 + $0xf0] sm:$0xff]  ;;  %v3126_v50 = vrot.slane %v3065_v28, 1  ;;  %v182_v51 = vsel %vm181_vm9, %v178_v32, %v180_v48  ;;  %v187_v52 = vsel %vm160_vm1, %v3032_v13, %v3057_v25  ;;  %v190_v53 = vsel %vm164_vm2, %v3068_v29, %v3071_v30  ;;  %v2857_v63 = vld [vmem:[#allocation5 + $0xa8] sm:$0xff]  ;;  %v2864_v48 = vld [vmem:[#allocation5 + $0xe0] sm:$0xff]  ;;  %s2528_s29 = sshll.u32 %s4372_s3, 4  ;;  %s2529_s29 = int_to_ptr.hbm [resolvable:$true] %s2528_s29 }
  0x1a   :  { %4425 = vst [vmem:[#allocation21_spill] sm:$0xff] %v3092_v37  ;;  %1303 = vmatpush.bf16.msra.mxu1 %v2867_v16  ;;  %2897 = vmatpush.bf16.msra.mxu2 %v3063_v27  ;;  %vm569_vm15 = vsmask.f32 5396  ;;  %v3137_v54 = vrot.slane %v3092_v37, 3  ;;  %v3140_v55 = vrot.slane %v3094_v38, 6  ;;  %v192_v56 = vsel %vm170_vm3, %v3032_v13, %v3057_v25  ;;  %v2865_v0 = vld [vmem:[#allocation5 + $0xe8] sm:$0xff] }
  0x1b   :  { %4426 = vst [vmem:[#allocation22_spill] sm:$0xff] %v3094_v38  ;;  %2898 = vmatpush.bf16.msra.mxu3 %v3063_v27  ;;  %v193_v57 = vsel %vm172_vm4, %v3068_v29, %v3071_v30  ;;  %v3149_v58 = vrot.slane %v3094_v38, 1  ;;  %v3152_v59 = vsel %vm168_vm7, %v163_v26, %v167_v46  ;;  %v197_v60 = vsel %vm164_vm2, %v3032_v13, %v3057_v25  ;;  %vm570_vm13 = vmor %vm3234_vm12, %vm569_vm15  ;;  %s2994_s30 = smov 128   ;;  %s2995_s4 = smov 8  }
  0x1c   :  { %v198_v61 = vsel %vm179_vm8, %v3068_v29, %v3071_v30  ;;  %vm479_vm6 = vcmask 1045509   ;;  %v3167_v1 = vrot.slane %v175_v47, 1  ;;  %v3169_v2 = vrot.slane %v182_v51, 2  ;;  %v2856_v47 = vld [vmem:[#allocation5 + $0xa0] sm:$0xff] }
  0x1d   :  { %1265 = vmatpush.bf16.msra.mxu0 %v2858_v43  ;;  %v3172_v3 = vsel %vm168_vm7, %v187_v52, %v190_v53  ;;  %v209_v4 = vsel %vm170_vm3, %v3040_v18, %v3081_v33  ;;  %vm481_vm0 = vcmask 1044483   ;;  %v194_v5 = vsel %vm174_vm5, %v192_v56, %v193_v57 }
  0x1e   :  { %1304 = vmatpush.bf16.msra.mxu1 %v2866_v44  ;;  %v204_v6 = vsel %vm160_vm1, %v3040_v18, %v3081_v33  ;;  %v210_v7 = vsel %vm172_vm4, %v3084_v34, %v3087_v35  ;;  %v214_v8 = vsel %vm164_vm2, %v3040_v18, %v3081_v33  ;;  %v199_v15 = vsel %vm181_vm9, %v197_v60, %v198_v61 }
  0x1f   :  { %v207_v16 = vsel %vm164_vm2, %v3084_v34, %v3087_v35  ;;  %v211_v26 = vsel %vm174_vm5, %v209_v4, %v210_v7  ;;  %v215_v31 = vsel %vm179_vm8, %v3084_v34, %v3087_v35  ;;  %v221_v43 = vsel %vm160_vm1, %v3044_v20, %v3090_v36 }
  0x20   :  { %v216_v42 = vsel %vm181_vm9, %v214_v8, %v215_v31  ;;  %v224_v44 = vsel %vm164_vm2, %v3097_v39, %v3100_v40  ;;  %v226_v46 = vsel %vm170_vm3, %v3044_v20, %v3090_v36  ;;  %vm573_vm11 = vsmask.f32 7452 }
  0x21   :  { %1266 = vmatpush.bf16.msra.mxu0 %v2857_v63  ;;  %v3212_v49 = vrot.slane %v194_v5, 1  ;;  %v227_v51 = vsel %vm172_vm4, %v3097_v39, %v3100_v40  ;;  %v231_v52 = vsel %vm164_vm2, %v3044_v20, %v3090_v36  ;;  %v232_v53 = vsel %vm179_vm8, %v3097_v39, %v3100_v40 }
  0x22   :  { %1305 = vmatpush.bf16.msra.mxu1 %v2865_v0  ;;  %v228_v56 = vsel %vm174_vm5, %v226_v46, %v227_v51  ;;  %v233_v57 = vsel %vm181_vm9, %v231_v52, %v232_v53  ;;  %v238_v60 = vsel %vm160_vm1, %v3054_v24, %v3103_v41  ;;  %v241_v61 = vsel %vm164_vm2, %v3109_v45, %v3126_v50 }
  0x23   :  { %v3238_v63 = vrot.slane %v199_v15, 2  ;;  %v3241_v0 = vsel %vm168_vm7, %v204_v6, %v207_v16  ;;  %v3243_v4 = vrot.slane %v211_v26, 1  ;;  %v243_v5 = vsel %vm170_vm3, %v3054_v24, %v3103_v41 }
  0x24   :  { %v3249_v7 = vsel %vm168_vm7, %v221_v43, %v224_v44  ;;  %v244_v8 = vsel %vm172_vm4, %v3109_v45, %v3126_v50  ;;  %v248_v15 = vsel %vm164_vm2, %v3054_v24, %v3103_v41  ;;  %v249_v6 = vsel %vm179_vm8, %v3109_v45, %v3126_v50 }
  0x25   :  { %1267 = vmatpush.bf16.msra.mxu0 %v2856_v47  ;;  %v3260_v16 = vrot.slane %v216_v42, 2  ;;  %v3262_v26 = vrot.slane %v228_v56, 1  ;;  %v3264_v31 = vrot.slane %v233_v57, 2  ;;  %v3267_v32 = vsel %vm168_vm7, %v238_v60, %v241_v61 }
  0x26   :  { %1306 = vmatpush.bf16.msra.mxu1 %v2864_v48  ;;  %v245_v43 = vsel %vm174_vm5, %v243_v5, %v244_v8  ;;  %v3274_v44 = vsel %vm181_vm9, %v248_v15, %v249_v6  ;;  %v3279_v42 = vsel %vm160_vm1, %v3092_v37, %v3137_v54  ;;  %v3284_v46 = vsel %vm164_vm2, %v3140_v55, %v3149_v58 }
  0x27   :  { %v260_v47 = vsel %vm170_vm3, %v3092_v37, %v3137_v54  ;;  %v478_v48 = vsel %vm172_vm4, %v3025_v10, %v3035_v14  ;;  %v480_v51 = vsel %vm479_vm6, %v3047_v21, %v3050_v22  ;;  %v485_v52 = vsel %vm172_vm4, %v3032_v13, %v3057_v25 }
  0x28   :  { %v261_v53 = vsel %vm172_vm4, %v3140_v55, %v3149_v58  ;;  %v482_v56 = vsel %vm481_vm0, %v478_v48, %v480_v51  ;;  %v486_v57 = vsel %vm479_vm6, %v3068_v29, %v3071_v30  ;;  %v490_v14 = vsel %vm172_vm4, %v3040_v18, %v3081_v33  ;;  %v2855_v51 = vld [vmem:[#allocation5 + $0x98] sm:$0xff]  ;;  %v3541_v18 = vld [vmem:[#allocation2 + $0xa4] sm:$0xf] }
  0x29   :  { %vm4435_vm15 = vsmask.f32 6424  ;;  %v484_v21 = vrot.slane %v482_v56, 3  ;;  %v487_v22 = vsel %vm481_vm0, %v485_v52, %v486_v57  ;;  %v491_v25 = vsel %vm479_vm6, %v3084_v34, %v3087_v35  ;;  %v2863_v52 = vld [vmem:[#allocation5 + $0xd8] sm:$0xff]  ;;  %1268 = vmatpush.bf16.msra.mxu0 %v2855_v51  ;;  %4464 = vst [vmem:[#allocation49_spill] sm:$0xff] %v3541_v18  ;;  %v2888_v35 = vld [vmem:[#allocation5 + $0x1a0] sm:$0xff] }
  0x2a   :  { %vm572_vm10 = vmor %vm570_vm13, %vm4435_vm15  ;;  %v575_v60 = vshrl.u32 %v3152_v59, 16  ;;  %v3314_v61 = vrot.slane %v245_v43, 1  ;;  %v492_v62 = vsel %vm481_vm0, %v490_v14, %v491_v25  ;;  %v495_v29 = vsel %vm172_vm4, %v3044_v20, %v3090_v36  ;;  %1307 = vmatpush.bf16.msra.mxu1 %v2863_v52 }
  0x2b   :  { %v496_v30 = vsel %vm479_vm6, %v3097_v39, %v3100_v40  ;;  %v262_v33 = vsel %vm174_vm5, %v260_v47, %v261_v53  ;;  %v489_v5 = vrot.slane %v487_v22, 3  ;;  %v494_v8 = vrot.slane %v492_v62, 3  ;;  %vm3326_vm14 = vmor %vm572_vm10, %vm573_vm11 }
  0x2c   :  { %4436 = vst [vmem:[#allocation23_spill] sm:$0xff] %v3314_v61  ;;  %v497_v34 = vsel %vm481_vm0, %v495_v29, %v496_v30  ;;  %v500_v15 = vsel %vm172_vm4, %v3054_v24, %v3103_v41  ;;  %v501_v36 = vsel %vm479_vm6, %v3109_v45, %v3126_v50  ;;  %v580_v39 = vshll.u32 %v3167_v1, 16  ;;  %v2851_v50 = vld [vmem:[#allocation5 + $0x78] sm:$0xff]  ;;  %v2850_v30 = vld [vmem:[#allocation5 + $0x70] sm:$0xff] }
  0x2d   :  { %v583_v40 = vshrl.u32 %v3167_v1, 16  ;;  %v499_v6 = vrot.slane %v497_v34, 3  ;;  %v588_v43 = vshll.u32 %v3169_v2, 16  ;;  %v591_v47 = vshrl.u32 %v3169_v2, 16  ;;  %1630 = vmatpush.bf16.msrb.mxu2 %v2851_v50  ;;  %1344 = vmatpush.bf16.msrb.mxu0 %v3023_v9  ;;  %v3385_v50 = vld [vmem:[#allocation2 + $0x48] sm:$0xff] }
  0x2e   :  { %v596_v48 = vshll.u32 %v484_v21, 16  ;;  %v582_v53 = vsel %vm3326_vm14, %v575_v60, %v580_v39  ;;  %v599_v41 = vshrl.u32 %v3172_v3, 16  ;;  %v604_v56 = vshll.u32 %v3212_v49, 16  ;;  %4443 = vst [vmem:[#allocation28_spill] sm:$0xff] %v3385_v50 }
  0x2f   :  { %v607_v45 = vshrl.u32 %v3212_v49, 16  ;;  %v590_v57 = vsel %vm3326_vm14, %v583_v40, %v588_v43  ;;  %v612_v21 = vshll.u32 %v3238_v63, 16  ;;  %v615_v22 = vshrl.u32 %v3238_v63, 16  ;;  %999 = vst [vmem:[#allocation1] ss:$9 sm:$0xff] %v582_v53 }
  0x30   :  { %v598_v14 = vsel %vm3326_vm14, %v591_v47, %v596_v48  ;;  %v606_v25 = vsel %vm3326_vm14, %v599_v41, %v604_v56  ;;  %v620_v60 = vshll.u32 %v489_v5, 16  ;;  %v623_v62 = vshrl.u32 %v3241_v0, 16  ;;  %1002 = vst [vmem:[#allocation1 + $0x1] ss:$9 sm:$0xff] %v590_v57  ;;  %v3373_v41 = vld [vmem:[#allocation2 + $0x50] sm:$0xf] }
  0x31   :  { %v628_v29 = vshll.u32 %v3243_v4, 16  ;;  %v502_v34 = vsel %vm481_vm0, %v500_v15, %v501_v36  ;;  %v614_v39 = vsel %vm3326_vm14, %v607_v45, %v612_v21  ;;  %v631_v40 = vshrl.u32 %v3243_v4, 16  ;;  %1005 = vst [vmem:[#allocation1 + $0x2] ss:$9 sm:$0xff] %v598_v14  ;;  %1631 = vmatpush.bf16.msrb.mxu2 %v2850_v30  ;;  %1345 = vmatpush.bf16.msrb.mxu0 %v3030_v12 }
  0x32   :  { %v636_v43 = vshll.u32 %v3260_v16, 16  ;;  %v622_v5 = vsel %vm3326_vm14, %v615_v22, %v620_v60  ;;  %v639_v48 = vshrl.u32 %v3260_v16, 16  ;;  %v644_v51 = vshll.u32 %v494_v8, 16  ;;  %1008 = vst [vmem:[#allocation1 + $0x3] ss:$9 sm:$0xff] %v606_v25  ;;  %v3396_v25 = vld [vmem:[#allocation2 + $0x54] sm:$0xff] }
  0x33   :  { %v630_v47 = vsel %vm3326_vm14, %v623_v62, %v628_v29  ;;  %v3367_v9 = vrot.slane %v3274_v44, 2  ;;  %v647_v36 = vshrl.u32 %v3249_v7, 16  ;;  %v652_v52 = vshll.u32 %v3262_v26, 16  ;;  %1011 = vst [vmem:[#allocation1 + $0x4] ss:$9 sm:$0xff] %v614_v39 }
  0x34   :  { %v638_v15 = vsel %vm3326_vm14, %v631_v40, %v636_v43  ;;  %v504_v53 = vrot.slane %v502_v34, 3  ;;  %1014 = vst [vmem:[#allocation1 + $0x5] ss:$9 sm:$0xff] %v622_v5  ;;  %v3379_v44 = vsel %vm168_vm7, %v3279_v42, %v3284_v46  ;;  %v3381_v8 = vrot.slane %v262_v33, 1  ;;  %v3399_v29 = vld [vmem:[#allocation2 + $0x5c] sm:$0xf] }
  0x35   :  { %4439 = vst [vmem:[#allocation24_spill] sm:$0xff] %v3367_v9  ;;  %v655_v56 = vshrl.u32 %v3262_v26, 16  ;;  %v660_v45 = vshll.u32 %v3264_v31, 16  ;;  %v646_v57 = vsel %vm3326_vm14, %v639_v48, %v644_v51  ;;  %v663_v14 = vshrl.u32 %v3264_v31, 16  ;;  %1346 = vmatpush.bf16.msrb.mxu0 %v3063_v27 }
  0x36   :  { %4440 = vst [vmem:[#allocation25_spill] sm:$0xff] %v3373_v41  ;;  %v668_v12 = vshll.u32 %v499_v6, 16  ;;  %v671_v21 = vshrl.u32 %v3267_v32, 16  ;;  %v654_v42 = vsel %vm3326_vm14, %v647_v36, %v652_v52  ;;  %v676_v46 = vshll.u32 %v3314_v61, 16 }
  0x37   :  { %4441 = vst [vmem:[#allocation26_spill] sm:$0xff] %v3379_v44  ;;  %v679_v33 = vshrl.u32 %v3314_v61, 16  ;;  %v684_v22 = vshll.u32 %v3367_v9, 16  ;;  %v687_v60 = vshrl.u32 %v3367_v9, 16  ;;  %v692_v62 = vshll.u32 %v504_v53, 16 }
  0x38   :  { %4442 = vst [vmem:[#allocation27_spill] sm:$0xff] %v3381_v8  ;;  %v130_v6 = vrot.slane %v3385_v50, 3  ;;  %v131_v30 = vrot.slane %v3373_v41, 6  ;;  %v662_v34 = vsel %vm3326_vm14, %v655_v56, %v660_v45  ;;  %v695_v39 = vshrl.u32 %v3379_v44, 16 }
  0x39   :  { %1017 = vst [vmem:[#allocation1 + $0x6] ss:$9 sm:$0xff] %v630_v47  ;;  %v700_v40 = vshll.u32 %v3381_v8, 16  ;;  %v132_v43 = vrot.slane %v3373_v41, 1  ;;  %v670_v5 = vsel %vm3326_vm14, %v663_v14, %v668_v12  ;;  %v133_v47 = vrot.slane %v3396_v25, 3 }
  0x3a   :  { %1020 = vst [vmem:[#allocation1 + $0x7] ss:$9 sm:$0xff] %v638_v15  ;;  %v265_v48 = vsel %vm164_vm2, %v3092_v37, %v3137_v54  ;;  %v266_v27 = vsel %vm179_vm8, %v3140_v55, %v3149_v58  ;;  %v134_v51 = vrot.slane %v3399_v29, 6  ;;  %v135_v15 = vrot.slane %v3399_v29, 1 }
  0x3b   :  { %4444 = vst [vmem:[#allocation29_spill] sm:$0xff] %v3396_v25  ;;  %v277_v36 = vsel %vm170_vm3, %v3385_v50, %v130_v6  ;;  %v278_v52 = vsel %vm172_vm4, %v131_v30, %v132_v43  ;;  %v678_v53 = vsel %vm3326_vm14, %v671_v21, %v676_v46  ;;  %v686_v56 = vsel %vm3326_vm14, %v679_v33, %v684_v22 }
  0x3c   :  { %4445 = vst [vmem:[#allocation30_spill] sm:$0xff] %v3399_v29  ;;  %v694_v45 = vsel %vm3326_vm14, %v687_v60, %v692_v62  ;;  %v267_v14 = vsel %vm181_vm9, %v265_v48, %v266_v27  ;;  %v702_v12 = vsel %vm3326_vm14, %v695_v39, %v700_v40  ;;  %v272_v24 = vsel %vm160_vm1, %v3385_v50, %v130_v6  ;;  %v2849_v62 = vld [vmem:[#allocation5 + $0x68] sm:$0xff] }
  0x3d   :  { %v282_v21 = vsel %vm164_vm2, %v3385_v50, %v130_v6  ;;  %v283_v46 = vsel %vm179_vm8, %v131_v30, %v132_v43  ;;  %v275_v33 = vsel %vm164_vm2, %v131_v30, %v132_v43  ;;  %v279_v22 = vsel %vm174_vm5, %v277_v36, %v278_v52  ;;  %1632 = vmatpush.bf16.msrb.mxu2 %v2849_v62 }
  0x3e   :  { %v294_v60 = vsel %vm170_vm3, %v3396_v25, %v133_v47  ;;  %v3443_v39 = vrot.slane %v267_v14, 2  ;;  %v295_v40 = vsel %vm172_vm4, %v134_v51, %v135_v15  ;;  %v299_v48 = vsel %vm164_vm2, %v3396_v25, %v133_v47 }
  0x3f   :  { %v505_v27 = vsel %vm172_vm4, %v3092_v37, %v3137_v54  ;;  %v3458_v36 = vrot.slane %v279_v22, 1  ;;  %v296_v52 = vsel %vm174_vm5, %v294_v60, %v295_v40  ;;  %v510_v14 = vsel %vm172_vm4, %v3385_v50, %v130_v6  ;;  %v3515_v50 = vld [vmem:[#allocation2 + $0x84] sm:$0xff]  ;;  %v3521_v37 = vld [vmem:[#allocation2 + $0x98] sm:$0xf] }
  0x40   :  { %4447 = vst [vmem:[#allocation32_spill] sm:$0xff] %v3443_v39  ;;  %v511_v54 = vsel %vm479_vm6, %v131_v30, %v132_v43  ;;  %v3473_v6 = vsel %vm168_vm7, %v272_v24, %v275_v33  ;;  %v3477_v43 = vrot.slane %v296_v52, 1  ;;  %v708_v62 = vshll.u32 %v3443_v39, 16 }
  0x41   :  { %v1021_v41 = vld [vmem:[#allocation1] sm:$0xff]  ;;  %v1022_v29 = vld [vmem:[#allocation1 + $0x9] sm:$0xff]  ;;  %v3432_v28 = vld [vmem:[#allocation1 + $0x12] sm:$0xff]  ;;  %4448 = vst [vmem:[#allocation33_spill] sm:$0xff] %v3458_v36  ;;  %v512_v22 = vsel %vm481_vm0, %v510_v14, %v511_v54  ;;  %v719_v33 = vshrl.u32 %v3473_v6, 16  ;;  %v724_v40 = vshll.u32 %v3458_v36, 16 }
  0x42   :  { %4446 = vst [vmem:[#allocation31_spill] sm:$0xff] %v3432_v28  ;;  %1269 = vmatmul.bf16.vlgmr.msra.gmra.mxu0 %v1021_v41  ;;  %1308 = vmatmul.bf16.vlgmr.msra.gmra.mxu1 %v1022_v29  ;;  %v284_v41 = vsel %vm181_vm9, %v282_v21, %v283_v46  ;;  %v289_v29 = vsel %vm160_vm1, %v3396_v25, %v133_v47  ;;  %v514_v30 = vrot.slane %v512_v22, 3  ;;  %v748_v52 = vshll.u32 %v3477_v43, 16 }
  0x43   :  { %1025 = vst [vmem:[#allocation1] ss:$9 sm:$0xff] %v646_v57  ;;  %v300_v57 = vsel %vm179_vm8, %v134_v51, %v135_v15  ;;  %v515_v46 = vsel %vm172_vm4, %v3396_v25, %v133_v47  ;;  %vm1244_vm11 = vcmask 359424   ;;  %v3517_v25 = vld [vmem:[#allocation2 + $0x8c] sm:$0xf] }
  0x44   :  { %1027 = vst [vmem:[#allocation1 + $0x1] ss:$9 sm:$0xff] %v654_v42  ;;  %v506_v42 = vsel %vm479_vm6, %v3140_v55, %v3149_v58  ;;  %v301_v21 = vsel %vm181_vm9, %v299_v48, %v300_v57  ;;  %v516_v55 = vsel %vm479_vm6, %v134_v51, %v135_v15  ;;  %v292_v58 = vsel %vm164_vm2, %v134_v51, %v135_v15 }
  0x45   :  { %1029 = vst [vmem:[#allocation1 + $0x2] ss:$9 sm:$0xff] %v662_v34  ;;  %v507_v34 = vsel %vm481_vm0, %v505_v27, %v506_v42  ;;  %v517_v60 = vsel %vm481_vm0, %v515_v46, %v516_v55  ;;  %v3479_v47 = vrot.slane %v301_v21, 2  ;;  %v703_v15 = vshrl.u32 %v3381_v8, 16  ;;  %v3494_v27 = vld [vmem:[#allocation2 + $0x6c] sm:$0xff] }
  0x46   :  { %1031 = vst [vmem:[#allocation1 + $0x3] ss:$9 sm:$0xff] %v670_v5  ;;  %v509_v5 = vrot.slane %v507_v34, 3  ;;  %v519_v51 = vrot.slane %v517_v60, 3  ;;  %v751_v34 = vshrl.u32 %v3477_v43, 16  ;;  %v726_v60 = vsel %vm3326_vm14, %v719_v33, %v724_v40 }
  0x47   :  { %1033 = vst [vmem:[#allocation1 + $0x4] ss:$9 sm:$0xff] %v678_v53  ;;  %v3475_v53 = vrot.slane %v284_v41, 2  ;;  %v740_v41 = vshll.u32 %v514_v30, 16  ;;  %v756_v14 = vshll.u32 %v3479_v47, 16  ;;  %v710_v54 = vsel %vm3326_vm14, %v703_v15, %v708_v62 }
  0x48   :  { %1035 = vst [vmem:[#allocation1 + $0x5] ss:$9 sm:$0xff] %v686_v56  ;;  %v3482_v56 = vsel %vm168_vm7, %v289_v29, %v292_v58  ;;  %v716_v24 = vshll.u32 %v509_v5, 16  ;;  %v3492_v29 = vld [vmem:[#allocation2 + $0x60] sm:$0xff]  ;;  %v3500_v21 = vld [vmem:[#allocation2 + $0x68] sm:$0xf] }
  0x49   :  { %1037 = vst [vmem:[#allocation1 + $0x6] ss:$9 sm:$0xff] %v694_v45  ;;  %v711_v45 = vshrl.u32 %v3443_v39, 16  ;;  %v732_v48 = vshll.u32 %v3475_v53, 16  ;;  %v735_v57 = vshrl.u32 %v3475_v53, 16  ;;  %v743_v42 = vshrl.u32 %v3482_v56, 16 }
  0x4a   :  { %4449 = vst [vmem:[#allocation34_spill] sm:$0xff] %v3473_v6  ;;  %v759_v46 = vshrl.u32 %v3479_v47, 16  ;;  %v764_v55 = vshll.u32 %v519_v51, 16  ;;  %v3505_v58 = vld [vmem:[#allocation2 + $0x74] sm:$0xf]  ;;  %v3507_v5 = vld [vmem:[#allocation2 + $0x78] sm:$0xff] }
  0x4b   :  { %4450 = vst [vmem:[#allocation35_spill] sm:$0xff] %v3475_v53  ;;  %v718_v22 = vsel %vm3326_vm14, %v711_v45, %v716_v24  ;;  %v3513_v30 = vld [vmem:[#allocation2 + $0x80] sm:$0xf]  ;;  %v3524_v19 = vrot.slane %v3492_v29, 3  ;;  %v3527_v45 = vrot.slane %v3500_v21, 6  ;;  %v3530_v24 = vrot.slane %v3500_v21, 1 }
  0x4c   :  { %1039 = vst [vmem:[#allocation1 + $0x7] ss:$9 sm:$0xff] %v702_v12  ;;  %v727_v12 = vshrl.u32 %v3458_v36, 16  ;;  %v742_v33 = vsel %vm3326_vm14, %v735_v57, %v740_v41  ;;  %v750_v40 = vsel %vm3326_vm14, %v743_v42, %v748_v52  ;;  %v3544_v23 = vrot.slane %v3494_v27, 3  ;;  %v3548_v57 = vld [vmem:[#allocation2 + $0x9c] sm:$0xff] }
  0x4d   :  { %4451 = vst [vmem:[#allocation36_spill] sm:$0xff] %v3477_v43  ;;  %v3551_v41 = vrot.slane %v3505_v58, 6  ;;  %v3554_v42 = vrot.slane %v3505_v58, 1  ;;  %v3557_v52 = vrot.slane %v3507_v5, 3  ;;  %v316_v20 = vsel %vm164_vm2, %v3492_v29, %v3524_v19 }
  0x4e   :  { %4452 = vst [vmem:[#allocation37_spill] sm:$0xff] %v3479_v47  ;;  %v734_v51 = vsel %vm3326_vm14, %v727_v12, %v732_v48  ;;  %v758_v12 = vsel %vm3326_vm14, %v751_v34, %v756_v14  ;;  %v3539_v48 = vld [vmem:[#allocation2 + $0x90] sm:$0xff]  ;;  %v3560_v34 = vrot.slane %v3513_v30, 6  ;;  %v3563_v14 = vrot.slane %v3513_v30, 1 }
  0x4f   :  { %4453 = vst [vmem:[#allocation38_spill] sm:$0xff] %v3482_v56  ;;  %v329_v11 = vsel %vm172_vm4, %v3551_v41, %v3554_v42  ;;  %v323_v10 = vsel %vm160_vm1, %v3494_v27, %v3544_v23  ;;  %v350_v13 = vsel %vm164_vm2, %v3507_v5, %v3557_v52  ;;  %v340_v39 = vsel %vm160_vm1, %v3507_v5, %v3557_v52 }
  0x50   :  { %4454 = vst [vmem:[#allocation39_spill] sm:$0xff] %v3492_v29  ;;  %v346_v17 = vsel %vm172_vm4, %v3560_v34, %v3563_v14  ;;  %v351_v47 = vsel %vm179_vm8, %v3560_v34, %v3563_v14  ;;  %v343_v8 = vsel %vm164_vm2, %v3560_v34, %v3563_v14  ;;  %v525_v28 = vsel %vm172_vm4, %v3494_v27, %v3544_v23 }
  0x51   :  { %4455 = vst [vmem:[#allocation40_spill] sm:$0xff] %v3494_v27  ;;  %v526_v61 = vsel %vm479_vm6, %v3551_v41, %v3554_v42 }
  0x52   :  { %4456 = vst [vmem:[#allocation41_spill] sm:$0xff] %v3500_v21  ;;  %v3596_v21 = vrot.slane %v3541_v18, 6 }
  0x53   :  { %4457 = vst [vmem:[#allocation42_spill] sm:$0xff] %v3505_v58  ;;  %v1040_v15 = vld [vmem:[#allocation1] sm:$0xff]  ;;  %v1041_v62 = vld [vmem:[#allocation1 + $0x9] sm:$0xff]  ;;  %v1042_v38 = vld [vmem:[#allocation1 + $0x12] sm:$0xff]  ;;  %v3599_v58 = vrot.slane %v3541_v18, 1  ;;  %v328_v18 = vsel %vm170_vm3, %v3494_v27, %v3544_v23 }
  0x54   :  { %4458 = vst [vmem:[#allocation43_spill] sm:$0xff] %v3507_v5  ;;  %2667 = vmatmul.msk.bf16.vlgmr.msra.gmra.mxu2 %vm1244_vm11, %v1042_v38  ;;  %v766_v38 = vsel %vm3326_vm14, %v759_v46, %v764_v55  ;;  %1274 = vmatmul.bf16.gmra.mxu0 %v1040_v15  ;;  %v3569_v46 = vrot.slane %v3517_v25, 6  ;;  %v3572_v55 = vrot.slane %v3517_v25, 1  ;;  %v312_v15 = vsel %vm172_vm4, %v3527_v45, %v3530_v24 }
  0x55   :  { %4459 = vst [vmem:[#allocation44_spill] sm:$0xff] %v3513_v30  ;;  %1313 = vmatmul.bf16.gmra.mxu1 %v1041_v62  ;;  %v3584_v62 = vrot.slane %v3539_v48, 3  ;;  %v3590_v30 = vrot.slane %v3521_v37, 1  ;;  %v330_v53 = vsel %vm174_vm5, %v328_v18, %v329_v11 }
  0x56   :  { %4460 = vst [vmem:[#allocation45_spill] sm:$0xff] %v3515_v50  ;;  %v3675_v44 = vrot.slane %v330_v53, 1 }
  0x57   :  { %4461 = vst [vmem:[#allocation46_spill] sm:$0xff] %v3517_v25  ;;  %v3593_v25 = vrot.slane %v3548_v57, 3 }
  0x58   :  { %4462 = vst [vmem:[#allocation47_spill] sm:$0xff] %v3521_v37 }
  0x59   :  { %1044 = vst [vmem:[#allocation1] ss:$9 sm:$0xff] %v710_v54  ;;  %v3566_v54 = vrot.slane %v3515_v50, 3 }
  0x5a   :  { %4463 = vst [vmem:[#allocation48_spill] sm:$0xff] %v3539_v48 }
  0x5b   :  { %1046 = vst [vmem:[#allocation1 + $0x1] ss:$9 sm:$0xff] %v718_v22  ;;  %v306_v22 = vsel %vm160_vm1, %v3492_v29, %v3524_v19  ;;  %v362_v36 = vsel %vm170_vm3, %v3515_v50, %v3566_v54 }
  0x5c   :  { %1048 = vst [vmem:[#allocation1 + $0x2] ss:$9 sm:$0xff] %v726_v60  ;;  %v311_v60 = vsel %vm170_vm3, %v3492_v29, %v3524_v19 }
  0x5d   :  { %1050 = vst [vmem:[#allocation1 + $0x3] ss:$9 sm:$0xff] %v734_v51  ;;  %v3587_v51 = vrot.slane %v3521_v37, 6  ;;  %v313_v37 = vsel %vm174_vm5, %v311_v60, %v312_v15  ;;  %v333_v60 = vsel %vm164_vm2, %v3494_v27, %v3544_v23  ;;  %v334_v15 = vsel %vm179_vm8, %v3551_v41, %v3554_v42 }
  0x5e   :  { %1052 = vst [vmem:[#allocation1 + $0x4] ss:$9 sm:$0xff] %v742_v33  ;;  %v309_v33 = vsel %vm164_vm2, %v3527_v45, %v3530_v24  ;;  %v335_v6 = vsel %vm181_vm9, %v333_v60, %v334_v15  ;;  %v367_v15 = vsel %vm164_vm2, %v3515_v50, %v3566_v54 }
  0x5f   :  { %1054 = vst [vmem:[#allocation1 + $0x5] ss:$9 sm:$0xff] %v750_v40  ;;  %v317_v40 = vsel %vm179_vm8, %v3527_v45, %v3530_v24  ;;  %v3642_v43 = vsel %vm168_vm7, %v306_v22, %v309_v33  ;;  %v3659_v22 = vrot.slane %v313_v37, 1  ;;  %v352_v33 = vsel %vm181_vm9, %v350_v13, %v351_v47 }
  0x60   :  { %1056 = vst [vmem:[#allocation1 + $0x6] ss:$9 sm:$0xff] %v758_v12  ;;  %v326_v12 = vsel %vm164_vm2, %v3551_v41, %v3554_v42  ;;  %v318_v56 = vsel %vm181_vm9, %v316_v20, %v317_v40  ;;  %v363_v20 = vsel %vm172_vm4, %v3569_v46, %v3572_v55  ;;  %v368_v37 = vsel %vm179_vm8, %v3569_v46, %v3572_v55 }
  0x61   :  { %1058 = vst [vmem:[#allocation1 + $0x7] ss:$9 sm:$0xff] %v766_v38  ;;  %v345_v38 = vsel %vm170_vm3, %v3507_v5, %v3557_v52  ;;  %v3662_v11 = vsel %vm168_vm7, %v323_v10, %v326_v12  ;;  %v3666_v40 = vrot.slane %v318_v56, 2  ;;  %v364_v60 = vsel %vm174_vm5, %v362_v36, %v363_v20 }
  0x62   :  { %v347_v18 = vsel %vm174_vm5, %v345_v38, %v346_v17  ;;  %v3677_v10 = vrot.slane %v335_v6, 2  ;;  %v3680_v17 = vsel %vm168_vm7, %v340_v39, %v343_v8  ;;  %v3685_v13 = vsel %vm160_vm1, %v3515_v50, %v3566_v54 }
  0x63   :  { %v3687_v36 = vrot.slane %v347_v18, 1  ;;  %v3689_v47 = vrot.slane %v352_v33, 2  ;;  %v3694_v56 = vsel %vm164_vm2, %v3569_v46, %v3572_v55  ;;  %v3699_v6 = vsel %vm160_vm1, %v3539_v48, %v3584_v62 }
  0x64   :  { %v3701_v39 = vrot.slane %v364_v60, 1  ;;  %v3704_v53 = vsel %vm181_vm9, %v367_v15, %v368_v37  ;;  %v379_v12 = vsel %vm170_vm3, %v3539_v48, %v3584_v62  ;;  %v380_v38 = vsel %vm172_vm4, %v3587_v51, %v3590_v30 }
  0x65   :  { %v3716_v18 = vsel %vm164_vm2, %v3587_v51, %v3590_v30  ;;  %v384_v33 = vsel %vm164_vm2, %v3539_v48, %v3584_v62  ;;  %v520_v60 = vsel %vm172_vm4, %v3492_v29, %v3524_v19  ;;  %v521_v15 = vsel %vm479_vm6, %v3527_v45, %v3530_v24 }
  0x66   :  { %v522_v9 = vsel %vm481_vm0, %v520_v60, %v521_v15  ;;  %v381_v19 = vsel %vm174_vm5, %v379_v12, %v380_v38  ;;  %v3741_v45 = vsel %vm160_vm1, %v3548_v57, %v3593_v25  ;;  %v527_v24 = vsel %vm481_vm0, %v525_v28, %v526_v61  ;;  %v2843_v15 = vld [vmem:[#allocation5 + $0x38] sm:$0xff] }
  0x67   :  { %v530_v60 = vsel %vm172_vm4, %v3507_v5, %v3557_v52  ;;  %v524_v23 = vrot.slane %v522_v9, 3  ;;  %v531_v41 = vsel %vm479_vm6, %v3560_v34, %v3563_v14  ;;  %v535_v42 = vsel %vm172_vm4, %v3515_v50, %v3566_v54  ;;  %1591 = vmatpush.bf16.msrb.mxu3 %v2843_v15 }
  0x68   :  { %v1061_v8 = vld [vmem:[#allocation1 + $0x12] sm:$0xff]  ;;  %v1059_v20 = vld [vmem:[#allocation1] sm:$0xff]  ;;  %v1060_v37 = vld [vmem:[#allocation1 + $0x9] sm:$0xff]  ;;  %v536_v12 = vsel %vm479_vm6, %v3569_v46, %v3572_v55  ;;  %v396_v61 = vsel %vm170_vm3, %v3548_v57, %v3593_v25  ;;  %v397_v9 = vsel %vm172_vm4, %v3596_v21, %v3599_v58  ;;  %v529_v52 = vrot.slane %v527_v24, 3 }
  0x69   :  { %2668 = vmatmul.msk.bf16.gmra.mxu2 %vm1244_vm11, %v1061_v8  ;;  %v385_v8 = vsel %vm179_vm8, %v3587_v51, %v3590_v30  ;;  %1279 = vmatmul.bf16.gmra.mxu0 %v1059_v20  ;;  %v532_v34 = vsel %vm481_vm0, %v530_v60, %v531_v41  ;;  %v3765_v14 = vsel %vm481_vm0, %v535_v42, %v536_v12  ;;  %v767_v46 = vshrl.u32 %v3642_v43, 16  ;;  %v2848_v60 = vld [vmem:[#allocation5 + $0x60] sm:$0xff]  ;;  %v2842_v12 = vld [vmem:[#allocation5 + $0x30] sm:$0xff] }
  0x6a   :  { %1318 = vmatmul.bf16.gmra.mxu1 %v1060_v37  ;;  %v386_v28 = vsel %vm181_vm9, %v384_v33, %v385_v8  ;;  %v540_v54 = vsel %vm172_vm4, %v3539_v48, %v3584_v62  ;;  %v541_v55 = vsel %vm479_vm6, %v3587_v51, %v3590_v30  ;;  %v772_v38 = vshll.u32 %v3659_v22, 16  ;;  %1633 = vmatpush.bf16.msrb.mxu2 %v2848_v60 }
  0x6b   :  { %v775_v20 = vshrl.u32 %v3659_v22, 16  ;;  %v780_v33 = vshll.u32 %v3666_v40, 16  ;;  %v783_v37 = vshrl.u32 %v3666_v40, 16  ;;  %v788_v8 = vshll.u32 %v524_v23, 16  ;;  %1592 = vmatpush.bf16.msrb.mxu3 %v2842_v12 }
  0x6c   :  { %v791_v24 = vshrl.u32 %v3662_v11, 16  ;;  %v796_v62 = vshll.u32 %v3675_v44, 16  ;;  %v774_v41 = vsel %vm3326_vm14, %v767_v46, %v772_v38  ;;  %v799_v51 = vshrl.u32 %v3675_v44, 16  ;;  %v2847_v46 = vld [vmem:[#allocation5 + $0x58] sm:$0xff] }
  0x6d   :  { %v782_v30 = vsel %vm3326_vm14, %v775_v20, %v780_v33  ;;  %v804_v42 = vshll.u32 %v3677_v10, 16  ;;  %v790_v23 = vsel %vm3326_vm14, %v783_v37, %v788_v8  ;;  %v807_v5 = vshrl.u32 %v3677_v10, 16  ;;  %1063 = vst [vmem:[#allocation1] ss:$9 sm:$0xff] %v774_v41 }
  0x6e   :  { %v798_v48 = vsel %vm3326_vm14, %v791_v24, %v796_v62  ;;  %v812_v50 = vshll.u32 %v529_v52, 16  ;;  %v815_v20 = vshrl.u32 %v3680_v17, 16  ;;  %v820_v33 = vshll.u32 %v3687_v36, 16  ;;  %1065 = vst [vmem:[#allocation1 + $0x1] ss:$9 sm:$0xff] %v782_v30  ;;  %1634 = vmatpush.bf16.msrb.mxu2 %v2847_v46 }
  0x6f   :  { %v806_v38 = vsel %vm3326_vm14, %v799_v51, %v804_v42  ;;  %v823_v15 = vshrl.u32 %v3687_v36, 16  ;;  %v534_v37 = vrot.slane %v532_v34, 3  ;;  %v542_v8 = vsel %vm481_vm0, %v540_v54, %v541_v55  ;;  %1067 = vst [vmem:[#allocation1 + $0x2] ss:$9 sm:$0xff] %v790_v23  ;;  %v2841_v54 = vld [vmem:[#allocation5 + $0x28] sm:$0xff]  ;;  %v2840_v42 = vld [vmem:[#allocation5 + $0x20] sm:$0xff] }
  0x70   :  { %v814_v24 = vsel %vm3326_vm14, %v807_v5, %v812_v50  ;;  %v828_v52 = vshll.u32 %v3689_v47, 16  ;;  %v3801_v62 = vrot.slane %v3704_v53, 2  ;;  %v394_v60 = vsel %vm164_vm2, %v3596_v21, %v3599_v58  ;;  %1069 = vst [vmem:[#allocation1 + $0x3] ss:$9 sm:$0xff] %v798_v48  ;;  %1593 = vmatpush.bf16.msrb.mxu3 %v2841_v54 }
  0x71   :  { %v398_v41 = vsel %vm174_vm5, %v396_v61, %v397_v9  ;;  %v822_v34 = vsel %vm3326_vm14, %v815_v20, %v820_v33  ;;  %v3812_v50 = vsel %vm168_vm7, %v3685_v13, %v3694_v56  ;;  %v3814_v5 = vrot.slane %v381_v19, 1  ;;  %1071 = vst [vmem:[#allocation1 + $0x4] ss:$9 sm:$0xff] %v806_v38  ;;  %v2846_v61 = vld [vmem:[#allocation5 + $0x50] sm:$0xff]  ;;  %v3826_v13 = vld [vmem:[#allocation2 + $0xa8] sm:$0xff] }
  0x72   :  { %v539_v53 = vrot.slane %v3765_v14, 3  ;;  %v830_v55 = vsel %vm3326_vm14, %v823_v15, %v828_v52  ;;  %v3822_v48 = vsel %vm168_vm7, %v3699_v6, %v3716_v18  ;;  %v3824_v9 = vrot.slane %v386_v28, 2  ;;  %1073 = vst [vmem:[#allocation1 + $0x5] ss:$9 sm:$0xff] %v814_v24  ;;  %1635 = vmatpush.bf16.msrb.mxu2 %v2846_v61  ;;  %v3842_v20 = vld [vmem:[#allocation2 + $0xb0] sm:$0xf] }
  0x73   :  { %v544_v30 = vrot.slane %v542_v8, 3  ;;  %v3830_v56 = vsel %vm168_vm7, %v3741_v45, %v394_v60  ;;  %v3832_v19 = vrot.slane %v398_v41, 1  ;;  %v831_v14 = vshrl.u32 %v3689_v47, 16  ;;  %1075 = vst [vmem:[#allocation1 + $0x6] ss:$9 sm:$0xff] %v822_v34  ;;  %v3849_v60 = vld [vmem:[#allocation2 + $0xb4] sm:$0xff] }
  0x74   :  { %4465 = vst [vmem:[#allocation50_spill] sm:$0xff] %v3824_v9  ;;  %v836_v51 = vshll.u32 %v534_v37, 16  ;;  %v839_v6 = vshrl.u32 %v3812_v50, 16  ;;  %v844_v18 = vshll.u32 %v3701_v39, 16  ;;  %v847_v28 = vshrl.u32 %v3701_v39, 16  ;;  %1594 = vmatpush.bf16.msrb.mxu3 %v2840_v42 }
  0x75   :  { %4466 = vst [vmem:[#allocation51_spill] sm:$0xff] %v3830_v56  ;;  %v852_v12 = vshll.u32 %v3801_v62, 16  ;;  %v855_v45 = vshrl.u32 %v3801_v62, 16  ;;  %v860_v23 = vshll.u32 %v539_v53, 16  ;;  %v863_v46 = vshrl.u32 %v3822_v48, 16 }
  0x76   :  { %1077 = vst [vmem:[#allocation1 + $0x7] ss:$9 sm:$0xff] %v830_v55  ;;  %v868_v38 = vshll.u32 %v3814_v5, 16  ;;  %v871_v33 = vshrl.u32 %v3814_v5, 16  ;;  %v876_v15 = vshll.u32 %v3824_v9, 16  ;;  %v879_v37 = vshrl.u32 %v3824_v9, 16 }
  0x77   :  { %4467 = vst [vmem:[#allocation52_spill] sm:$0xff] %v3842_v20  ;;  %v884_v8 = vshll.u32 %v544_v30, 16  ;;  %v887_v24 = vshrl.u32 %v3830_v56, 16  ;;  %v892_v52 = vshll.u32 %v3832_v19, 16  ;;  %v154_v41 = vrot.slane %v3826_v13, 3 }
  0x78   :  { %v3852_v34 = vld [vmem:[#allocation2 + $0xbc] sm:$0xf]  ;;  %v155_v54 = vrot.slane %v3842_v20, 6  ;;  %v156_v53 = vrot.slane %v3842_v20, 1  ;;  %v401_v55 = vsel %vm164_vm2, %v3548_v57, %v3593_v25  ;;  %v402_v61 = vsel %vm179_vm8, %v3596_v21, %v3599_v58 }
  0x79   :  { %v838_v30 = vsel %vm3326_vm14, %v831_v14, %v836_v51  ;;  %v846_v42 = vsel %vm3326_vm14, %v839_v6, %v844_v18  ;;  %v854_v29 = vsel %vm3326_vm14, %v847_v28, %v852_v12  ;;  %v862_v20 = vsel %vm3326_vm14, %v855_v45, %v860_v23 }
  0x7a   :  { %v870_v27 = vsel %vm3326_vm14, %v863_v46, %v868_v38  ;;  %v878_v56 = vsel %vm3326_vm14, %v871_v33, %v876_v15  ;;  %v886_v9 = vsel %vm3326_vm14, %v879_v37, %v884_v8  ;;  %v157_v14 = vrot.slane %v3849_v60, 3 }
  0x7b   :  { %v894_v51 = vsel %vm3326_vm14, %v887_v24, %v892_v52  ;;  %v158_v12 = vrot.slane %v3852_v34, 6  ;;  %v159_v45 = vrot.slane %v3852_v34, 1  ;;  %v403_v23 = vsel %vm181_vm9, %v401_v55, %v402_v61 }
  0x7c   :  { %v408_v46 = vsel %vm160_vm1, %v3826_v13, %v154_v41  ;;  %v413_v38 = vsel %vm170_vm3, %v3826_v13, %v154_v41  ;;  %v414_v33 = vsel %vm172_vm4, %v155_v54, %v156_v53  ;;  %v418_v15 = vsel %vm164_vm2, %v3826_v13, %v154_v41 }
  0x7d   :  { %v1078_v6 = vld [vmem:[#allocation1] sm:$0xff]  ;;  %v1079_v18 = vld [vmem:[#allocation1 + $0x9] sm:$0xff]  ;;  %v1080_v28 = vld [vmem:[#allocation1 + $0x12] sm:$0xff]  ;;  %v419_v37 = vsel %vm179_vm8, %v155_v54, %v156_v53  ;;  %v545_v8 = vsel %vm172_vm4, %v3548_v57, %v3593_v25  ;;  %v546_v24 = vsel %vm479_vm6, %v3596_v21, %v3599_v58  ;;  %v411_v52 = vsel %vm164_vm2, %v155_v54, %v156_v53 }
  0x7e   :  { %1082 = vst [vmem:[#allocation1] ss:$9 sm:$0xff] %v838_v30  ;;  %2669 = vmatmul.msk.bf16.gmra.mxu2 %vm1244_vm11, %v1080_v28  ;;  %v547_v55 = vsel %vm481_vm0, %v545_v8, %v546_v24  ;;  %v550_v61 = vsel %vm172_vm4, %v3826_v13, %v154_v41  ;;  %1284 = vmatmul.bf16.gmra.mxu0 %v1078_v6  ;;  %v2845_v8 = vld [vmem:[#allocation5 + $0x48] sm:$0xff]  ;;  %v895_v24 = vshrl.u32 %v3832_v19, 16 }
  0x7f   :  { %1084 = vst [vmem:[#allocation1 + $0x1] ss:$9 sm:$0xff] %v846_v42  ;;  %1323 = vmatmul.bf16.gmra.mxu1 %v1079_v18  ;;  %v415_v30 = vsel %vm174_vm5, %v413_v38, %v414_v33  ;;  %v430_v25 = vsel %vm170_vm3, %v3849_v60, %v157_v14  ;;  %v431_v42 = vsel %vm172_vm4, %v158_v12, %v159_v45 }
  0x80   :  { %1086 = vst [vmem:[#allocation1 + $0x2] ss:$9 sm:$0xff] %v854_v29  ;;  %v551_v21 = vsel %vm479_vm6, %v155_v54, %v156_v53  ;;  %v3906_v29 = vrot.slane %v403_v23, 2  ;;  %v420_v58 = vsel %vm181_vm9, %v418_v15, %v419_v37  ;;  %v435_v41 = vsel %vm164_vm2, %v3849_v60, %v157_v14  ;;  %v2839_v23 = vld [vmem:[#allocation5 + $0x18] sm:$0xff]  ;;  %1636 = vmatpush.bf16.msrb.mxu2 %v2845_v8 }
  0x81   :  { %1088 = vst [vmem:[#allocation1 + $0x3] ss:$9 sm:$0xff] %v862_v20  ;;  %v436_v6 = vsel %vm179_vm8, %v158_v12, %v159_v45  ;;  %v549_v20 = vrot.slane %v547_v55, 3  ;;  %v552_v18 = vsel %vm481_vm0, %v550_v61, %v551_v21  ;;  %v555_v28 = vsel %vm172_vm4, %v3849_v60, %v157_v14  ;;  %1595 = vmatpush.bf16.msrb.mxu3 %v2839_v23  ;;  %v2838_v55 = vld [vmem:[#allocation5 + $0x10] sm:$0xff] }
  0x82   :  { %1090 = vst [vmem:[#allocation1 + $0x4] ss:$9 sm:$0xff] %v870_v27  ;;  %v556_v38 = vsel %vm479_vm6, %v158_v12, %v159_v45  ;;  %v3917_v27 = vsel %vm168_vm7, %v408_v46, %v411_v52  ;;  %v3919_v54 = vrot.slane %v415_v30, 1  ;;  %v432_v53 = vsel %vm174_vm5, %v430_v25, %v431_v42 }
  0x83   :  { %1092 = vst [vmem:[#allocation1 + $0x5] ss:$9 sm:$0xff] %v878_v56  ;;  %v3922_v33 = vrot.slane %v420_v58, 2  ;;  %v425_v56 = vsel %vm160_vm1, %v3849_v60, %v157_v14  ;;  %v428_v15 = vsel %vm164_vm2, %v158_v12, %v159_v45  ;;  %v437_v37 = vsel %vm181_vm9, %v435_v41, %v436_v6  ;;  %v2844_v14 = vld [vmem:[#allocation5 + $0x40] sm:$0xff] }
  0x84   :  { %1094 = vst [vmem:[#allocation1 + $0x6] ss:$9 sm:$0xff] %v886_v9  ;;  %v554_v9 = vrot.slane %v552_v18, 3  ;;  %v557_v46 = vsel %vm481_vm0, %v555_v28, %v556_v38  ;;  %v900_v52 = vshll.u32 %v3906_v29, 16  ;;  %v903_v61 = vshrl.u32 %v3906_v29, 16  ;;  %v2837_v28 = vld [vmem:[#allocation5 + $0x8] sm:$0xff]  ;;  %1637 = vmatpush.bf16.msrb.mxu2 %v2844_v14 }
  0x85   :  { %1096 = vst [vmem:[#allocation1 + $0x7] ss:$9 sm:$0xff] %v894_v51  ;;  %v3931_v51 = vrot.slane %v432_v53, 1  ;;  %v908_v30 = vshll.u32 %v549_v20, 16  ;;  %v3935_v12 = vsel %vm168_vm7, %v425_v56, %v428_v15  ;;  %v3937_v45 = vrot.slane %v437_v37, 2  ;;  %1596 = vmatpush.bf16.msrb.mxu3 %v2838_v55 }
  0x86   :  { %v911_v25 = vshrl.u32 %v3917_v27, 16  ;;  %v916_v42 = vshll.u32 %v3919_v54, 16  ;;  %v559_v21 = vrot.slane %v557_v46, 3  ;;  %v919_v58 = vshrl.u32 %v3919_v54, 16 }
  0x87   :  { %v924_v41 = vshll.u32 %v3922_v33, 16  ;;  %v902_v6 = vsel %vm3326_vm14, %v895_v24, %v900_v52  ;;  %v927_v20 = vshrl.u32 %v3922_v33, 16  ;;  %v932_v18 = vshll.u32 %v554_v9, 16 }
  0x88   :  { %v910_v38 = vsel %vm3326_vm14, %v903_v61, %v908_v30  ;;  %v935_v53 = vshrl.u32 %v3935_v12, 16  ;;  %v940_v23 = vshll.u32 %v3931_v51, 16  ;;  %v918_v8 = vsel %vm3326_vm14, %v911_v25, %v916_v42  ;;  %v2836_v30 = vld [vmem:[#allocation5] sm:$0xff] }
  0x89   :  { %v943_v46 = vshrl.u32 %v3931_v51, 16  ;;  %v948_v9 = vshll.u32 %v3937_v45, 16  ;;  %v926_v24 = vsel %vm3326_vm14, %v919_v58, %v924_v41  ;;  %v951_v52 = vshrl.u32 %v3937_v45, 16  ;;  %1597 = vmatpush.bf16.msrb.mxu3 %v2837_v28  ;;  %v2828_v58 = vld [vmem:[#allocation5 + $0x1c0] sm:$0xf]  ;;  %v2881_v41 = vld [vmem:[#allocation5 + $0x168] sm:$0xff] }
  0x8a   :  { %v956_v55 = vshll.u32 %v559_v21, 16  ;;  %v934_v61 = vsel %vm3326_vm14, %v927_v20, %v932_v18  ;;  %v942_v14 = vsel %vm3326_vm14, %v935_v53, %v940_v23  ;;  %v2889_v21 = vld [vmem:[#allocation5 + $0x1a8] sm:$0xff]  ;;  %2062 = vmatpush.bf16.msrb.mxu1 %v2881_v41  ;;  %vm4468_vm0 = vcmask 1045504   ;;  %v2880_v23 = vld [vmem:[#allocation5 + $0x160] sm:$0xff] }
  0x8b   :  { %v950_v25 = vsel %vm3326_vm14, %v943_v46, %v948_v9  ;;  %v4475_v46 = vld [vmem:[#allocation34_spill] sm:$0xff]  ;;  %v4476_v9 = vld [vmem:[#allocation33_spill] sm:$0xff]  ;;  %vm4481_vm1 = vmmov %vm4468_vm0 }
  0x8c   :  { %v1097_v56 = vld [vmem:[#allocation1] sm:$0xff]  ;;  %v1098_v15 = vld [vmem:[#allocation1 + $0x9] sm:$0xff]  ;;  %v1099_v37 = vld [vmem:[#allocation1 + $0x12] sm:$0xff]  ;;  %v958_v42 = vsel %vm3326_vm14, %v951_v52, %v956_v55 }
  0x8d   :  { %2670 = vmatmul.msk.bf16.vlgmr.msra.gmra.mxu3 %vm1244_vm11, %v1099_v37  ;;  %1101 = vst [vmem:[#allocation1] ss:$9 sm:$0xff] %v902_v6  ;;  %v2892_v6 = vld [vmem:[#allocation5 + $0x1c0] sm:$0x30]  ;;  %v4478_v52 = vld [vmem:[#allocation38_spill] sm:$0xff]  ;;  %vm4516_vm5 = vmmov %vm4468_vm0 }
  0x8e   :  { %1103 = vst [vmem:[#allocation1 + $0x1] ss:$9 sm:$0xff] %v910_v38  ;;  %1289 = vmatmul.bf16.gmra.mxu0 %v1097_v56  ;;  %1598 = vmatpush.bf16.msrb.mxu3 %v2836_v30  ;;  %v2829_v20 = vor.u32 %v2892_v6, %v2828_v58  ;;  %v2887_v56 = vld [vmem:[#allocation5 + $0x198] sm:$0xff]  ;;  %v4479_v55 = vld [vmem:[#allocation36_spill] sm:$0xff]  ;;  %v2885_v30 = vld [vmem:[#allocation5 + $0x188] sm:$0xff] }
  0x8f   :  { %1105 = vst [vmem:[#allocation1 + $0x2] ss:$9 sm:$0xff] %v918_v8  ;;  %1328 = vmatmul.bf16.gmra.mxu1 %v1098_v15  ;;  %v4471_v15 = vld [vmem:[#allocation24_spill] sm:$0xff]  ;;  %v4473_v8 = vld [vmem:[#allocation27_spill] sm:$0xff]  ;;  %vm4517_vm7 = vmmov %vm4468_vm0 }
  0x90   :  { %1107 = vst [vmem:[#allocation1 + $0x3] ss:$9 sm:$0xff] %v926_v24  ;;  %v2060_v18 = vsel %vm4468_vm0, %v2829_v20, 0  ;;  %2063 = vmatpush.bf16.msrb.mxu1 %v2880_v23  ;;  %v4477_v24 = vld [vmem:[#allocation35_spill] sm:$0xff]  ;;  %vm4518_vm9 = vmmov %vm4468_vm0 }
  0x91   :  { %1109 = vst [vmem:[#allocation1 + $0x4] ss:$9 sm:$0xff] %v934_v61  ;;  %2145 = vmatpush.bf16.msra.mxu2 %v2060_v18  ;;  %v4480_v61 = vld [vmem:[#allocation37_spill] sm:$0xff]  ;;  %vm4519_vm12 = vmmov %vm4468_vm0 }
  0x92   :  { %1111 = vst [vmem:[#allocation1 + $0x5] ss:$9 sm:$0xff] %v942_v14  ;;  %2101 = vmatpush.bf16.msra.mxu3 %v2889_v21  ;;  %v2746_v14 = vld [vmem:[#allocation5 + $0x90] sm:$0xf]  ;;  %v2877_v21 = vld [vmem:[#allocation5 + $0x148] sm:$0xff]  ;;  %vm4520_vm13 = vmmov %vm4468_vm0 }
  0x93   :  { %1113 = vst [vmem:[#allocation1 + $0x6] ss:$9 sm:$0xff] %v950_v25  ;;  %v2854_v25 = vld [vmem:[#allocation5 + $0x90] sm:$0x30]  ;;  %v2853_v18 = vld [vmem:[#allocation5 + $0x88] sm:$0xff]  ;;  %vm4521_vm15 = vmmov %vm4468_vm0 }
  0x94   :  { %1115 = vst [vmem:[#allocation1 + $0x7] ss:$9 sm:$0xff] %v958_v42  ;;  %v2747_v42 = vor.u32 %v2854_v25, %v2746_v14  ;;  %vm4522_vm10 = vmmov %vm4468_vm0 }
  0x95   :  { %vm4523_vm14 = vmmov %vm4468_vm0 }
  0x96   :  { %2102 = vmatpush.bf16.msra.mxu3 %v2888_v35  ;;  %v1589_v20 = vsel %vm4481_vm1, %v2747_v42, 0  ;;  %v4491_v35 = vld [vmem:[#allocation16_spill] sm:$0xff]  ;;  %vm2502_vm1 = vcmask 1047559  }
  0x97   :  { %1674 = vmatpush.bf16.msra.mxu0 %v1589_v20  ;;  %v2876_v42 = vld [vmem:[#allocation5 + $0x140] sm:$0xff]  ;;  %v2875_v20 = vld [vmem:[#allocation5 + $0x138] sm:$0xff] }
  0x9a   :  { %2103 = vmatpush.bf16.msra.mxu3 %v2887_v56 }
  0x9b   :  { %v1116_v28 = vld [vmem:[#allocation1] sm:$0xff]  ;;  %v1117_v38 = vld [vmem:[#allocation1 + $0x9] sm:$0xff]  ;;  %v1118_v53 = vld [vmem:[#allocation1 + $0x12] sm:$0xff]  ;;  %1675 = vmatpush.bf16.msra.mxu0 %v2853_v18 }
  0x9c   :  { %1378 = vst [vmem:[#allocation1] ss:$9 sm:$0xff] %v3152_v59 }
  0x9d   :  { %2671 = vmatmul.msk.bf16.gmra.mxu3 %vm1244_vm11, %v1118_v53  ;;  %1380 = vst [vmem:[#allocation1 + $0x1] ss:$9 sm:$0xff] %v3167_v1  ;;  %v4490_v53 = vld [vmem:[#allocation15_spill] sm:$0xff] }
  0x9e   :  { %1382 = vst [vmem:[#allocation1 + $0x2] ss:$9 sm:$0xff] %v3169_v2  ;;  %1294 = vmatmul.bf16.gmra.mxu0 %v1116_v28  ;;  %v2884_v28 = vld [vmem:[#allocation5 + $0x180] sm:$0xff] }
  0x9f   :  { %1384 = vst [vmem:[#allocation1 + $0x3] ss:$9 sm:$0xff] %v3172_v3  ;;  %1333 = vmatmul.bf16.gmra.mxu1 %v1117_v38  ;;  %v2879_v3 = vld [vmem:[#allocation5 + $0x158] sm:$0xff] }
  0xa0   :  { %1386 = vst [vmem:[#allocation1 + $0x4] ss:$9 sm:$0xff] %v3212_v49  ;;  %2064 = vmatpush.bf16.msrb.mxu1 %v2879_v3  ;;  %v4469_v49 = vld [vmem:[#allocation23_spill] sm:$0xff] }
  0xa1   :  { %1388 = vst [vmem:[#allocation1 + $0x5] ss:$9 sm:$0xff] %v3238_v63  ;;  %v2891_v63 = vld [vmem:[#allocation5 + $0x1b8] sm:$0xff] }
  0xa2   :  { %1390 = vst [vmem:[#allocation1 + $0x6] ss:$9 sm:$0xff] %v3241_v0  ;;  %v2886_v0 = vld [vmem:[#allocation5 + $0x190] sm:$0xff]  ;;  %2146 = vmatpush.bf16.msra.mxu2 %v2891_v63 }
  0xa3   :  { %1392 = vst [vmem:[#allocation1 + $0x7] ss:$9 sm:$0xff] %v3243_v4  ;;  %v4470_v4 = vld [vmem:[#allocation31_spill] sm:$0xff]  ;;  %2104 = vmatpush.bf16.msra.mxu3 %v2886_v0 }
  0xa4   :  { %v4494_v0 = vld [vmem:[#allocation19_spill] sm:$0xff] }
  0xa7   :  { %2105 = vmatpush.bf16.msra.mxu3 %v2885_v30  ;;  %v4501_v30 = vld [vmem:[#allocation42_spill] sm:$0xff] }
  0xaa   :  { %v1394_v59 = vld [vmem:[#allocation1 + $0x9] sm:$0xff]  ;;  %v1395_v1 = vld [vmem:[#allocation1 + $0x12] sm:$0xff]  ;;  %v1393_v2 = vld [vmem:[#allocation1] sm:$0xff] }
  0xab   :  { %1638 = vmatmul.bf16.vlgmr.msrb.gmra.mxu2 %v1394_v59  ;;  %1396 = vst [vmem:[#allocation1] ss:$9 sm:$0xff] %v3260_v16  ;;  %v4472_v16 = vld [vmem:[#allocation26_spill] sm:$0xff]  ;;  %2106 = vmatpush.bf16.msra.mxu3 %v2884_v28 }
  0xac   :  { %1397 = vst [vmem:[#allocation1 + $0x1] ss:$9 sm:$0xff] %v3249_v7 }
  0xad   :  { %1599 = vmatmul.bf16.vlgmr.msrb.gmra.mxu3 %v1393_v2  ;;  %1398 = vst [vmem:[#allocation1 + $0x2] ss:$9 sm:$0xff] %v3262_v26  ;;  %v4493_v2 = vld [vmem:[#allocation22_spill] sm:$0xff] }
  0xae   :  { %1399 = vst [vmem:[#allocation1 + $0x3] ss:$9 sm:$0xff] %v3264_v31  ;;  %2666 = vmatmul.msk.bf16.vlgmr.msrb.gmra.mxu0 %vm1244_vm11, %v4470_v4  ;;  %v4474_v31 = vld [vmem:[#allocation32_spill] sm:$0xff] }
  0xaf   :  { %1400 = vst [vmem:[#allocation1 + $0x4] ss:$9 sm:$0xff] %v3267_v32  ;;  %v2878_v32 = vld [vmem:[#allocation5 + $0x150] sm:$0xff]  ;;  %v4495_v4 = vld [vmem:[#allocation20_spill] sm:$0xff] }
  0xb0   :  { %1401 = vst [vmem:[#allocation1 + $0x5] ss:$9 sm:$0xff] %v4469_v49  ;;  %2065 = vmatpush.bf16.msrb.mxu1 %v2878_v32 }
  0xb1   :  { %1402 = vst [vmem:[#allocation1 + $0x6] ss:$9 sm:$0xff] %v4471_v15 }
  0xb2   :  { %1403 = vst [vmem:[#allocation1 + $0x7] ss:$9 sm:$0xff] %v4472_v16 }
  0xb4   :  { %2066 = vmatpush.bf16.msrb.mxu1 %v2877_v21  ;;  %v2890_v21 = vld [vmem:[#allocation5 + $0x1b0] sm:$0xff] }
  0xb5   :  { %2147 = vmatpush.bf16.msra.mxu2 %v2890_v21  ;;  %v4510_v21 = vld [vmem:[#allocation47_spill] sm:$0xff] }
  0xb8   :  { %2067 = vmatpush.bf16.msrb.mxu1 %v2876_v42  ;;  %v4509_v42 = vld [vmem:[#allocation48_spill] sm:$0xff] }
  0xb9   :  { %v1405_v7 = vld [vmem:[#allocation1 + $0x9] sm:$0xff]  ;;  %v1406_v26 = vld [vmem:[#allocation1 + $0x12] sm:$0xff]  ;;  %v1404_v37 = vld [vmem:[#allocation1] sm:$0xff] }
  0xba   :  { %1407 = vst [vmem:[#allocation1] ss:$9 sm:$0xff] %v4473_v8 }
  0xbb   :  { %1643 = vmatmul.bf16.gmra.mxu2 %v1405_v7  ;;  %1408 = vst [vmem:[#allocation1 + $0x1] ss:$9 sm:$0xff] %v4474_v31 }
  0xbc   :  { %1409 = vst [vmem:[#allocation1 + $0x2] ss:$9 sm:$0xff] %v4475_v46  ;;  %v4498_v46 = vld [vmem:[#allocation28_spill] sm:$0xff]  ;;  %2068 = vmatpush.bf16.msrb.mxu1 %v2875_v20 }
  0xbd   :  { %1604 = vmatmul.bf16.gmra.mxu3 %v1404_v37  ;;  %1410 = vst [vmem:[#allocation1 + $0x3] ss:$9 sm:$0xff] %v4476_v9  ;;  %v4497_v37 = vld [vmem:[#allocation30_spill] sm:$0xff]  ;;  %v4499_v9 = vld [vmem:[#allocation25_spill] sm:$0xff] }
  0xbe   :  { %1411 = vst [vmem:[#allocation1 + $0x4] ss:$9 sm:$0xff] %v4477_v24 }
  0xbf   :  { %1412 = vst [vmem:[#allocation1 + $0x5] ss:$9 sm:$0xff] %v4478_v52  ;;  %v1270_v14 = vpop.f32.mrf.mxu0  ;;  %v1309_v25 = vpop.f32.mrf.mxu1 }
  0xc0   :  { %1413 = vst [vmem:[#allocation1 + $0x6] ss:$9 sm:$0xff] %v4479_v55 }
  0xc1   :  { %1414 = vst [vmem:[#allocation1 + $0x7] ss:$9 sm:$0xff] %v4480_v61  ;;  %v4500_v61 = vld [vmem:[#allocation40_spill] sm:$0xff] }
  0xc8   :  { %v1416_v58 = vld [vmem:[#allocation1 + $0x9] sm:$0xff]  ;;  %v1417_v41 = vld [vmem:[#allocation1 + $0x12] sm:$0xff]  ;;  %v1415_v6 = vld [vmem:[#allocation1] sm:$0xff] }
  0xc9   :  { %1418 = vst [vmem:[#allocation1] ss:$9 sm:$0xff] %v3642_v43  ;;  %v2852_v43 = vld [vmem:[#allocation5 + $0x80] sm:$0xff] }
  0xca   :  { %1419 = vst [vmem:[#allocation1 + $0x1] ss:$9 sm:$0xff] %v3659_v22  ;;  %1676 = vmatpush.bf16.msra.mxu0 %v2852_v43 }
  0xcb   :  { %1648 = vmatmul.bf16.gmra.mxu2 %v1416_v58  ;;  %1420 = vst [vmem:[#allocation1 + $0x2] ss:$9 sm:$0xff] %v3666_v40  ;;  %v2883_v58 = vld [vmem:[#allocation5 + $0x178] sm:$0xff] }
  0xcc   :  { %1421 = vst [vmem:[#allocation1 + $0x3] ss:$9 sm:$0xff] %v3662_v11  ;;  %v4483_v11 = vld [vmem:[#allocation51_spill] sm:$0xff]  ;;  %2107 = vmatpush.bf16.msra.mxu3 %v2883_v58 }
  0xcd   :  { %1609 = vmatmul.bf16.gmra.mxu3 %v1415_v6  ;;  %1422 = vst [vmem:[#allocation1 + $0x4] ss:$9 sm:$0xff] %v3675_v44  ;;  %2748 = vmatmul.msk.bf16.vlgmr.msra.gmra.mxu0 %vm1244_vm11, %v1395_v1  ;;  %v4482_v44 = vld [vmem:[#allocation50_spill] sm:$0xff]  ;;  %v4492_v1 = vld [vmem:[#allocation21_spill] sm:$0xff] }
  0xce   :  { %1423 = vst [vmem:[#allocation1 + $0x5] ss:$9 sm:$0xff] %v3677_v10 }
  0xcf   :  { %1424 = vst [vmem:[#allocation1 + $0x6] ss:$9 sm:$0xff] %v3680_v17 }
  0xd0   :  { %1425 = vst [vmem:[#allocation1 + $0x7] ss:$9 sm:$0xff] %v3687_v36 }
  0xd7   :  { %v1427_v22 = vld [vmem:[#allocation1 + $0x9] sm:$0xff]  ;;  %v1426_v40 = vld [vmem:[#allocation1] sm:$0xff]  ;;  %v1428_v38 = vld [vmem:[#allocation1 + $0x12] sm:$0xff]  ;;  %v1353_v6 = vpop.f32.mrf.mxu2 }
  0xd8   :  { %1429 = vst [vmem:[#allocation1] ss:$9 sm:$0xff] %v3689_v47  ;;  %v4484_v47 = vld [vmem:[#allocation13_spill] sm:$0xff] }
  0xd9   :  { %1430 = vst [vmem:[#allocation1 + $0x1] ss:$9 sm:$0xff] %v3812_v50 }
  0xda   :  { %1431 = vst [vmem:[#allocation1 + $0x2] ss:$9 sm:$0xff] %v3701_v39  ;;  %v4485_v39 = vld [vmem:[#allocation14_spill] sm:$0xff] }
  0xdb   :  { %1653 = vmatmul.bf16.gmra.mxu2 %v1427_v22  ;;  %1432 = vst [vmem:[#allocation1 + $0x3] ss:$9 sm:$0xff] %v3801_v62  ;;  %v4502_v22 = vld [vmem:[#allocation39_spill] sm:$0xff] }
  0xdc   :  { %1433 = vst [vmem:[#allocation1 + $0x4] ss:$9 sm:$0xff] %v3822_v48  ;;  %v4487_v48 = vld [vmem:[#allocation12_spill] sm:$0xff] }
  0xdd   :  { %1434 = vst [vmem:[#allocation1 + $0x5] ss:$9 sm:$0xff] %v3814_v5  ;;  %1614 = vmatmul.bf16.gmra.mxu3 %v1426_v40  ;;  %2749 = vmatmul.msk.bf16.gmra.mxu0 %vm1244_vm11, %v1406_v26  ;;  %v4486_v5 = vld [vmem:[#allocation11_spill] sm:$0xff]  ;;  %v4496_v26 = vld [vmem:[#allocation29_spill] sm:$0xff] }
  0xde   :  { %1435 = vst [vmem:[#allocation1 + $0x6] ss:$9 sm:$0xff] %v4482_v44  ;;  %v4503_v40 = vld [vmem:[#allocation41_spill] sm:$0xff] }
  0xdf   :  { %1436 = vst [vmem:[#allocation1 + $0x7] ss:$9 sm:$0xff] %v4483_v11 }
  0xe6   :  { %v1438_v10 = vld [vmem:[#allocation1 + $0x9] sm:$0xff]  ;;  %v1439_v17 = vld [vmem:[#allocation1 + $0x12] sm:$0xff]  ;;  %v1437_v36 = vld [vmem:[#allocation1] sm:$0xff] }
  0xe7   :  { %1440 = vst [vmem:[#allocation1] ss:$9 sm:$0xff] %v3832_v19 }
  0xe8   :  { %1441 = vst [vmem:[#allocation1 + $0x1] ss:$9 sm:$0xff] %v3906_v29 }
  0xe9   :  { %1442 = vst [vmem:[#allocation1 + $0x2] ss:$9 sm:$0xff] %v3917_v27 }
  0xea   :  { %1443 = vst [vmem:[#allocation1 + $0x3] ss:$9 sm:$0xff] %v3919_v54  ;;  %v4488_v54 = vld [vmem:[#allocation17_spill] sm:$0xff] }
  0xeb   :  { %1658 = vmatmul.bf16.gmra.mxu2 %v1438_v10  ;;  %1444 = vst [vmem:[#allocation1 + $0x4] ss:$9 sm:$0xff] %v3922_v33  ;;  %v4489_v33 = vld [vmem:[#allocation18_spill] sm:$0xff]  ;;  %v4504_v10 = vld [vmem:[#allocation45_spill] sm:$0xff] }
  0xec   :  { %1445 = vst [vmem:[#allocation1 + $0x5] ss:$9 sm:$0xff] %v3935_v12 }
  0xed   :  { %1446 = vst [vmem:[#allocation1 + $0x6] ss:$9 sm:$0xff] %v3931_v51  ;;  %1619 = vmatmul.bf16.gmra.mxu3 %v1437_v36  ;;  %2750 = vmatmul.msk.bf16.gmra.mxu0 %vm1244_vm11, %v1417_v41  ;;  %v4084_v41 = vadd.f32 %v1309_v25, %v1270_v14  ;;  %v1272_v36 = vpop.f32.mrf.mxu0 }
  0xee   :  { %1447 = vst [vmem:[#allocation1 + $0x7] ss:$9 sm:$0xff] %v3937_v45 }
  0xef   :  { %1717 = vst [vmem:[#allocation1 + $0x20] sm:$0xff] %v4484_v47  ;;  %v1311_v47 = vpop.f32.mrf.mxu1 }
  0xf0   :  { %1719 = vst [vmem:[#allocation1 + $0x28] sm:$0xff] %v4485_v39 }
  0xf5   :  { %v1448_v62 = vld [vmem:[#allocation1] sm:$0xff]  ;;  %v1449_v50 = vld [vmem:[#allocation1 + $0x9] sm:$0xff] }
  0xf6   :  { %1708 = vst [vmem:[#allocation1] sm:$0xff] %v4486_v5  ;;  %v4108_v5 = vpop.f32.mrf.mxu2 }
  0xf7   :  { %1710 = vst [vmem:[#allocation1 + $0x8] sm:$0xff] %v4487_v48  ;;  %v4026_v19 = vld [vmem:[#allocation1 + $0x21] ss:$4 sm:$0xff]  ;;  %v4028_v29 = vld [vmem:[#allocation1 + $0x22] ss:$4 sm:$0xff] }
  0xf8   :  { %v4030_v27 = vld [vmem:[#allocation1 + $0x23] ss:$4 sm:$0xff] }
  0xf9   :  { %1732 = vst [vmem:[#allocation1 + $0x20] sm:$0xff] %v4488_v54  ;;  %v4506_v48 = vld [vmem:[#allocation43_spill] sm:$0xff]  ;;  %v1450_v54 = vld [vmem:[#allocation1 + $0x12] sm:$0xff] }
  0xfa   :  { %1734 = vst [vmem:[#allocation1 + $0x28] sm:$0xff] %v4489_v33  ;;  %v4507_v33 = vld [vmem:[#allocation44_spill] sm:$0xff] }
  0xfb   :  { %1663 = vmatmul.bf16.gmra.mxu2 %v1449_v50 }
  0xfd   :  { %1624 = vmatmul.bf16.gmra.mxu3 %v1448_v62  ;;  %2751 = vmatmul.msk.bf16.gmra.mxu0 %vm1244_vm11, %v1428_v38 }
  0xfe   :  { %v4034_v51 = vld [vmem:[#allocation1 + $0x1] ss:$4 sm:$0xff]  ;;  %v4036_v12 = vld [vmem:[#allocation1 + $0x2] ss:$4 sm:$0xff]  ;;  %v4038_v45 = vld [vmem:[#allocation1 + $0x3] ss:$4 sm:$0xff] }
  0xff   :  { %1726 = vst [vmem:[#allocation1] sm:$0xff] %v4490_v53 }
 0x100   :  { %1728 = vst [vmem:[#allocation1 + $0x8] sm:$0xff] %v4491_v35 }
 0x101   :  { %v4042_v23 = vld [vmem:[#allocation1 + $0x21] ss:$4 sm:$0xff]  ;;  %v4044_v56 = vld [vmem:[#allocation1 + $0x22] ss:$4 sm:$0xff]  ;;  %v4046_v59 = vld [vmem:[#allocation1 + $0x23] ss:$4 sm:$0xff] }
 0x102   :  { %1744 = vst [vmem:[#allocation1 + $0x20] sm:$0xff] %v4492_v1 }
 0x103   :  { %1746 = vst [vmem:[#allocation1 + $0x28] sm:$0xff] %v4493_v2  ;;  %v4118_v2 = vadd.f32 %v1311_v47, %v1272_v36 }
 0x107   :  { %v4051_v3 = vld [vmem:[#allocation1 + $0x1] ss:$4 sm:$0xff]  ;;  %v4053_v49 = vld [vmem:[#allocation1 + $0x2] ss:$4 sm:$0xff]  ;;  %v4055_v63 = vld [vmem:[#allocation1 + $0x3] ss:$4 sm:$0xff] }
 0x108   :  { %1738 = vst [vmem:[#allocation1] sm:$0xff] %v4494_v0  ;;  %v2882_v0 = vld [vmem:[#allocation5 + $0x170] sm:$0xff] }
 0x109   :  { %1740 = vst [vmem:[#allocation1 + $0x8] sm:$0xff] %v4495_v4  ;;  %v2874_v4 = vld [vmem:[#allocation5 + $0x130] sm:$0xff]  ;;  %2108 = vmatpush.bf16.msra.mxu3 %v2882_v0 }
 0x10a   :  { %v4059_v15 = vld [vmem:[#allocation1 + $0x21] ss:$4 sm:$0xff]  ;;  %v4061_v16 = vld [vmem:[#allocation1 + $0x22] ss:$4 sm:$0xff]  ;;  %v4063_v7 = vld [vmem:[#allocation1 + $0x23] ss:$4 sm:$0xff]  ;;  %2069 = vmatpush.bf16.msrb.mxu1 %v2874_v4 }
 0x10b   :  { %1756 = vst [vmem:[#allocation1 + $0x20] sm:$0xff] %v4496_v26  ;;  %v4508_v26 = vld [vmem:[#allocation49_spill] sm:$0xff] }
 0x10c   :  { %1758 = vst [vmem:[#allocation1 + $0x28] sm:$0xff] %v4497_v37  ;;  %v1275_v37 = vpop.f32.mrf.mxu0 }
 0x10d   :  { %2752 = vmatmul.msk.bf16.gmra.mxu0 %vm1244_vm11, %v1439_v17  ;;  %v4505_v17 = vld [vmem:[#allocation46_spill] sm:$0xff] }
 0x110   :  { %v4067_v8 = vld [vmem:[#allocation1 + $0x1] ss:$4 sm:$0xff]  ;;  %v4069_v31 = vld [vmem:[#allocation1 + $0x2] ss:$4 sm:$0xff]  ;;  %v4071_v32 = vld [vmem:[#allocation1 + $0x3] ss:$4 sm:$0xff] }
 0x111   :  { %1750 = vst [vmem:[#allocation1] sm:$0xff] %v4498_v46  ;;  %v1314_v46 = vpop.f32.mrf.mxu1 }
 0x112   :  { %1752 = vst [vmem:[#allocation1 + $0x8] sm:$0xff] %v4499_v9  ;;  %v1315_v9 = vadd.f32 %v1314_v46, %v1275_v37 }
 0x113   :  { %v4075_v24 = vld [vmem:[#allocation1 + $0x21] ss:$4 sm:$0xff]  ;;  %v4077_v52 = vld [vmem:[#allocation1 + $0x22] ss:$4 sm:$0xff]  ;;  %v4079_v55 = vld [vmem:[#allocation1 + $0x23] ss:$4 sm:$0xff] }
 0x114   :  { %1768 = vst [vmem:[#allocation1 + $0x20] sm:$0xff] %v4500_v61  ;;  %v1358_v61 = vpop.f32.mrf.mxu2 }
 0x115   :  { %1770 = vst [vmem:[#allocation1 + $0x28] sm:$0xff] %v4501_v30 }
 0x119   :  { %v4086_v18 = vld [vmem:[#allocation1 + $0x1] ss:$4 sm:$0xff]  ;;  %v4088_v28 = vld [vmem:[#allocation1 + $0x2] ss:$4 sm:$0xff]  ;;  %v4090_v43 = vld [vmem:[#allocation1 + $0x3] ss:$4 sm:$0xff] }
 0x11a   :  { %1762 = vst [vmem:[#allocation1] sm:$0xff] %v4502_v22 }
 0x11b   :  { %1764 = vst [vmem:[#allocation1 + $0x8] sm:$0xff] %v4503_v40  ;;  %v4141_v40 = vpop.f32.mrf.mxu3 }
 0x11c   :  { %v4094_v38 = vld [vmem:[#allocation1 + $0x21] ss:$4 sm:$0xff]  ;;  %v4096_v44 = vld [vmem:[#allocation1 + $0x22] ss:$4 sm:$0xff]  ;;  %v4098_v11 = vld [vmem:[#allocation1 + $0x23] ss:$4 sm:$0xff]  ;;  %v4145_v47 = vpop.f32.mrf.mxu2 }
 0x11d   :  { %1780 = vst [vmem:[#allocation1 + $0x20] sm:$0xff] %v4504_v10  ;;  %2753 = vmatmul.msk.bf16.gmra.mxu0 %vm1244_vm11, %v1450_v54  ;;  %v1277_v10 = vpop.f32.mrf.mxu0 }
 0x11e   :  { %1782 = vst [vmem:[#allocation1 + $0x28] sm:$0xff] %v4505_v17  ;;  %v1316_v17 = vpop.f32.mrf.mxu1 }
 0x11f   :  { %v4143_v36 = vadd.f32 %v1316_v17, %v1277_v10 }
 0x122   :  { %v4102_v39 = vld [vmem:[#allocation1 + $0x1] ss:$4 sm:$0xff]  ;;  %v4104_v62 = vld [vmem:[#allocation1 + $0x2] ss:$4 sm:$0xff]  ;;  %v4106_v50 = vld [vmem:[#allocation1 + $0x3] ss:$4 sm:$0xff] }
 0x123   :  { %1774 = vst [vmem:[#allocation1] sm:$0xff] %v4506_v48 }
 0x124   :  { %1776 = vst [vmem:[#allocation1 + $0x8] sm:$0xff] %v4507_v33  ;;  %v4511_v33 = vld [vmem:[#allocation52_spill] sm:$0xff] }
 0x125   :  { %v4112_v53 = vld [vmem:[#allocation1 + $0x21] ss:$4 sm:$0xff]  ;;  %v4114_v35 = vld [vmem:[#allocation1 + $0x22] ss:$4 sm:$0xff]  ;;  %v4116_v1 = vld [vmem:[#allocation1 + $0x23] ss:$4 sm:$0xff] }
 0x126   :  { %1792 = vst [vmem:[#allocation1 + $0x20] sm:$0xff] %v3548_v57  ;;  %v4131_v57 = vadd.f32 %v1353_v6, %v1315_v9  ;;  %v1319_v0 = vpop.f32.mrf.mxu1  ;;  %v1363_v9 = vpop.f32.mrf.mxu2 }
 0x127   :  { %1794 = vst [vmem:[#allocation1 + $0x28] sm:$0xff] %v4508_v26 }
 0x12b   :  { %v4123_v30 = vld [vmem:[#allocation1 + $0x1] ss:$4 sm:$0xff]  ;;  %v4125_v14 = vld [vmem:[#allocation1 + $0x2] ss:$4 sm:$0xff]  ;;  %v4127_v25 = vld [vmem:[#allocation1 + $0x3] ss:$4 sm:$0xff] }
 0x12c   :  { %1786 = vst [vmem:[#allocation1] sm:$0xff] %v4509_v42 }
 0x12d   :  { %1788 = vst [vmem:[#allocation1 + $0x8] sm:$0xff] %v4510_v21 }
 0x12e   :  { %v4133_v58 = vld [vmem:[#allocation1 + $0x21] ss:$4 sm:$0xff]  ;;  %v4135_v20 = vld [vmem:[#allocation1 + $0x22] ss:$4 sm:$0xff]  ;;  %v4137_v22 = vld [vmem:[#allocation1 + $0x23] ss:$4 sm:$0xff] }
 0x12f   :  { %1804 = vst [vmem:[#allocation1 + $0x20] sm:$0xff] %v3849_v60  ;;  %v4155_v60 = vpop.f32.mrf.mxu3 }
 0x130   :  { %1806 = vst [vmem:[#allocation1 + $0x28] sm:$0xff] %v3852_v34  ;;  %v1280_v34 = vpop.f32.mrf.mxu0 }
 0x131   :  { %4512 = vst [vmem:[#allocation23_spill] sm:$0xff] %v4155_v60  ;;  %v1320_v46 = vadd.f32 %v1319_v0, %v1280_v34  ;;  %v1321_v34 = vpop.f32.mrf.mxu1 }
 0x133   :  { %v4169_v17 = vadd.f32 %v1358_v61, %v1320_v46  ;;  %v4181_v61 = vpop.f32.mrf.mxu2 }
 0x134   :  { %v4147_v6 = vld [vmem:[#allocation1 + $0x1] ss:$4 sm:$0xff]  ;;  %v4149_v48 = vld [vmem:[#allocation1 + $0x2] ss:$4 sm:$0xff]  ;;  %v4151_v54 = vld [vmem:[#allocation1 + $0x3] ss:$4 sm:$0xff] }
 0x135   :  { %1800 = vst [vmem:[#allocation1 + $0x8] sm:$0xff] %v4511_v33 }
 0x136   :  { %1798 = vst [vmem:[#allocation1] sm:$0xff] %v3826_v13 }
 0x137   :  { %v4157_v4 = vld [vmem:[#allocation1 + $0x21] ss:$4 sm:$0xff]  ;;  %v4159_v26 = vld [vmem:[#allocation1 + $0x22] ss:$4 sm:$0xff]  ;;  %v4161_v37 = vld [vmem:[#allocation1 + $0x23] ss:$4 sm:$0xff]  ;;  %v4175_v13 = vpop.f32.mrf.mxu3 }
 0x138   :  { %4513 = vst [vmem:[#allocation31_spill] sm:$0xff] %v4161_v37  ;;  %v1282_v33 = vpop.f32.mrf.mxu0 }
 0x139   :  { %v4179_v0 = vadd.f32 %v1321_v34, %v1282_v33 }
 0x13b   :  { %v4187_v46 = vpop.f32.mrf.mxu2 }
 0x13d   :  { %v4163_v42 = vld [vmem:[#allocation1 + $0x1] ss:$4 sm:$0xff]  ;;  %v4165_v21 = vld [vmem:[#allocation1 + $0x2] ss:$4 sm:$0xff]  ;;  %v4167_v10 = vld [vmem:[#allocation1 + $0x3] ss:$4 sm:$0xff] }
 0x13e   :  { %1849 = vst [vmem:[#allocation1] ss:$9 sm:$0xff] %v4034_v51 }
 0x13f   :  { %1851 = vst [vmem:[#allocation1 + $0x1] ss:$9 sm:$0xff] %v4036_v12  ;;  %v4185_v51 = vpop.f32.mrf.mxu3 }
 0x140   :  { %1853 = vst [vmem:[#allocation1 + $0x2] ss:$9 sm:$0xff] %v4038_v45  ;;  %v1285_v12 = vpop.f32.mrf.mxu0 }
 0x141   :  { %1855 = vst [vmem:[#allocation1 + $0x3] ss:$9 sm:$0xff] %v4026_v19  ;;  %v1324_v19 = vpop.f32.mrf.mxu1 }
 0x142   :  { %1857 = vst [vmem:[#allocation1 + $0x4] ss:$9 sm:$0xff] %v4028_v29  ;;  %v1325_v45 = vadd.f32 %v1324_v19, %v1285_v12 }
 0x143   :  { %1859 = vst [vmem:[#allocation1 + $0x5] ss:$9 sm:$0xff] %v4030_v27 }
 0x144   :  { %1861 = vst [vmem:[#allocation1 + $0x6] ss:$9 sm:$0xff] %v4051_v3  ;;  %v4190_v27 = vadd.f32 %v1363_v9, %v1325_v45  ;;  %v4203_v9 = vpop.f32.mrf.mxu2 }
 0x145   :  { %1863 = vst [vmem:[#allocation1 + $0x7] ss:$9 sm:$0xff] %v4053_v49 }
 0x147   :  { %v4197_v3 = vpop.f32.mrf.mxu3 }
 0x148   :  { %v1287_v49 = vpop.f32.mrf.mxu0 }
 0x14c   :  { %v1864_v29 = vld [vmem:[#allocation1] sm:$0xff]  ;;  %v1865_v60 = vld [vmem:[#allocation1 + $0x9] sm:$0xff]  ;;  %v1866_v37 = vld [vmem:[#allocation1 + $0x12] sm:$0xff]  ;;  %v1644_v12 = vpop.f32.mrf.mxu2 }
 0x14d   :  { %2070 = vmatmul.bf16.vlgmr.msrb.gmra.mxu1 %v1864_v29  ;;  %2109 = vmatmul.bf16.vlgmr.msra.gmra.mxu3 %v1865_v60  ;;  %1867 = vst [vmem:[#allocation1] ss:$9 sm:$0xff] %v4055_v63  ;;  %v1326_v60 = vpop.f32.mrf.mxu1 }
 0x14e   :  { %2830 = vmatmul.msk.bf16.vlgmr.msra.gmra.mxu2 %vm1244_vm11, %v1866_v37  ;;  %1868 = vst [vmem:[#allocation1 + $0x1] ss:$9 sm:$0xff] %v4042_v23  ;;  %v4201_v63 = vadd.f32 %v1326_v60, %v1287_v49 }
 0x14f   :  { %1869 = vst [vmem:[#allocation1 + $0x2] ss:$9 sm:$0xff] %v4044_v56  ;;  %v4206_v23 = vpop.f32.mrf.mxu3 }
 0x150   :  { %1870 = vst [vmem:[#allocation1 + $0x3] ss:$9 sm:$0xff] %v4046_v59  ;;  %v1290_v56 = vpop.f32.mrf.mxu0 }
 0x151   :  { %1871 = vst [vmem:[#allocation1 + $0x4] ss:$9 sm:$0xff] %v4067_v8 }
 0x152   :  { %1872 = vst [vmem:[#allocation1 + $0x5] ss:$9 sm:$0xff] %v4069_v31 }
 0x153   :  { %1873 = vst [vmem:[#allocation1 + $0x6] ss:$9 sm:$0xff] %v4071_v32 }
 0x154   :  { %1874 = vst [vmem:[#allocation1 + $0x7] ss:$9 sm:$0xff] %v4059_v15  ;;  %v1646_v19 = vpop.f32.mrf.mxu2 }
 0x155   :  { %v1329_v59 = vpop.f32.mrf.mxu1 }
 0x156   :  { %v1330_v34 = vadd.f32 %v1329_v59, %v1290_v56  ;;  %v1361_v59 = vadd.f32 %v4145_v47, %v4179_v0 }
 0x157   :  { %v1605_v15 = vpop.f32.mrf.mxu3 }
 0x158   :  { %v4211_v31 = vadd.f32 %v4141_v40, %v1330_v34  ;;  %v1292_v32 = vpop.f32.mrf.mxu0 }
 0x15b   :  { %v1875_v37 = vld [vmem:[#allocation1] sm:$0xff]  ;;  %v1876_v8 = vld [vmem:[#allocation1 + $0x9] sm:$0xff]  ;;  %v1877_v33 = vld [vmem:[#allocation1 + $0x12] sm:$0xff] }
 0x15c   :  { %1878 = vst [vmem:[#allocation1] ss:$9 sm:$0xff] %v4061_v16  ;;  %v1606_v16 = vadd.f32 %v1605_v15, %v4131_v57  ;;  %v1649_v56 = vpop.f32.mrf.mxu2 }
 0x15d   :  { %2075 = vmatmul.bf16.gmra.mxu1 %v1875_v37  ;;  %2114 = vmatmul.bf16.gmra.mxu3 %v1876_v8  ;;  %1879 = vst [vmem:[#allocation1 + $0x1] ss:$9 sm:$0xff] %v4063_v7  ;;  %v1331_v7 = vpop.f32.mrf.mxu1 }
 0x15e   :  { %2831 = vmatmul.msk.bf16.gmra.mxu2 %vm1244_vm11, %v1877_v33  ;;  %1880 = vst [vmem:[#allocation1 + $0x2] ss:$9 sm:$0xff] %v4086_v18  ;;  %v4221_v40 = vadd.f32 %v1331_v7, %v1292_v32  ;;  %v4223_v45 = vadd.f32 %v1644_v12, %v1606_v16  ;;  %v1356_v18 = vadd.f32 %v4108_v5, %v4143_v36 }
 0x15f   :  { %1881 = vst [vmem:[#allocation1 + $0x3] ss:$9 sm:$0xff] %v4088_v28  ;;  %v1607_v28 = vpop.f32.mrf.mxu3 }
 0x160   :  { %1882 = vst [vmem:[#allocation1 + $0x4] ss:$9 sm:$0xff] %v4090_v43  ;;  %v1608_v49 = vadd.f32 %v1607_v28, %v1356_v18 }
 0x161   :  { %1883 = vst [vmem:[#allocation1 + $0x5] ss:$9 sm:$0xff] %v4075_v24 }
 0x162   :  { %1884 = vst [vmem:[#allocation1 + $0x6] ss:$9 sm:$0xff] %v4077_v52  ;;  %v1295_v52 = vpop.f32.mrf.mxu0 }
 0x163   :  { %1885 = vst [vmem:[#allocation1 + $0x7] ss:$9 sm:$0xff] %v4079_v55  ;;  %v4229_v55 = vadd.f32 %v1646_v19, %v1608_v49 }
 0x165   :  { %v1334_v60 = vpop.f32.mrf.mxu1 }
 0x166   :  { %v1335_v57 = vadd.f32 %v1334_v60, %v1295_v52 }
 0x168   :  { %v4233_v5 = vadd.f32 %v4175_v13, %v1335_v57 }
 0x16a   :  { %v1886_v43 = vld [vmem:[#allocation1] sm:$0xff]  ;;  %v1887_v24 = vld [vmem:[#allocation1 + $0x9] sm:$0xff]  ;;  %v1888_v29 = vld [vmem:[#allocation1 + $0x12] sm:$0xff]  ;;  %v4242_v36 = vpop.f32.mrf.mxu0 }
 0x16b   :  { %1889 = vst [vmem:[#allocation1] ss:$9 sm:$0xff] %v4102_v39  ;;  %v1610_v39 = vpop.f32.mrf.mxu3 }
 0x16c   :  { %1890 = vst [vmem:[#allocation1 + $0x1] ss:$9 sm:$0xff] %v4104_v62  ;;  %v1611_v62 = vadd.f32 %v1610_v39, %v4169_v17 }
 0x16d   :  { %2080 = vmatmul.bf16.gmra.mxu1 %v1886_v43  ;;  %2119 = vmatmul.bf16.gmra.mxu3 %v1887_v24  ;;  %1891 = vst [vmem:[#allocation1 + $0x2] ss:$9 sm:$0xff] %v4106_v50  ;;  %v1651_v50 = vpop.f32.mrf.mxu2 }
 0x16e   :  { %2832 = vmatmul.msk.bf16.gmra.mxu2 %vm1244_vm11, %v1888_v29  ;;  %1892 = vst [vmem:[#allocation1 + $0x3] ss:$9 sm:$0xff] %v4094_v38  ;;  %v4244_v13 = vadd.f32 %v1649_v56, %v1611_v62 }
 0x16f   :  { %1893 = vst [vmem:[#allocation1 + $0x4] ss:$9 sm:$0xff] %v4096_v44 }
 0x170   :  { %1894 = vst [vmem:[#allocation1 + $0x5] ss:$9 sm:$0xff] %v4098_v11 }
 0x171   :  { %1895 = vst [vmem:[#allocation1 + $0x6] ss:$9 sm:$0xff] %v4123_v30 }
 0x172   :  { %1896 = vst [vmem:[#allocation1 + $0x7] ss:$9 sm:$0xff] %v4125_v14  ;;  %v1348_v30 = vpop.f32.mrf.mxu0 }
 0x173   :  { %v1612_v8 = vpop.f32.mrf.mxu3  ;;  %v1349_v14 = vadd.f32 %v1348_v30, %v4084_v41 }
 0x174   :  { %v1613_v11 = vadd.f32 %v1612_v8, %v1361_v59 }
 0x175   :  { %v1654_v17 = vpop.f32.mrf.mxu2  ;;  %v1601_v47 = vadd.f32 %v4197_v3, %v1349_v14 }
 0x176   :  { %v4254_v0 = vadd.f32 %v1651_v50, %v1613_v11 }
 0x179   :  { %v1897_v38 = vld [vmem:[#allocation1] sm:$0xff]  ;;  %v1898_v37 = vld [vmem:[#allocation1 + $0x9] sm:$0xff]  ;;  %v1899_v44 = vld [vmem:[#allocation1 + $0x12] sm:$0xff] }
 0x17a   :  { %1900 = vst [vmem:[#allocation1] ss:$9 sm:$0xff] %v4127_v25 }
 0x17b   :  { %1901 = vst [vmem:[#allocation1 + $0x1] ss:$9 sm:$0xff] %v4112_v53  ;;  %v4260_v53 = vadd.f32 %v4187_v46, %v1601_v47  ;;  %v1615_v41 = vpop.f32.mrf.mxu3 }
 0x17c   :  { %1902 = vst [vmem:[#allocation1 + $0x2] ss:$9 sm:$0xff] %v4114_v35  ;;  %v1616_v35 = vadd.f32 %v1615_v41, %v4190_v27 }
 0x17d   :  { %2085 = vmatmul.bf16.gmra.mxu1 %v1897_v38  ;;  %2124 = vmatmul.bf16.gmra.mxu3 %v1898_v37  ;;  %1903 = vst [vmem:[#allocation1 + $0x3] ss:$9 sm:$0xff] %v4116_v1  ;;  %v1350_v1 = vpop.f32.mrf.mxu0  ;;  %v1656_v3 = vpop.f32.mrf.mxu2 }
 0x17e   :  { %2833 = vmatmul.msk.bf16.gmra.mxu2 %vm1244_vm11, %v1899_v44  ;;  %1904 = vst [vmem:[#allocation1 + $0x4] ss:$9 sm:$0xff] %v4147_v6  ;;  %v1351_v25 = vadd.f32 %v1350_v1, %v4118_v2  ;;  %v4267_v34 = vadd.f32 %v1654_v17, %v1616_v35 }
 0x17f   :  { %1905 = vst [vmem:[#allocation1 + $0x5] ss:$9 sm:$0xff] %v4149_v48 }
 0x180   :  { %1906 = vst [vmem:[#allocation1 + $0x6] ss:$9 sm:$0xff] %v4151_v54  ;;  %v1603_v33 = vadd.f32 %v4206_v23, %v1351_v25 }
 0x181   :  { %1907 = vst [vmem:[#allocation1 + $0x7] ss:$9 sm:$0xff] %v4133_v58  ;;  %v1366_v58 = vadd.f32 %v4181_v61, %v4201_v63 }
 0x182   :  { %v4270_v6 = vadd.f32 %v4203_v9, %v1603_v33  ;;  %v4515_v9 = vld [vmem:[#allocation23_spill] sm:$0xff] }
 0x183   :  { %v1617_v54 = vpop.f32.mrf.mxu3 }
 0x184   :  { %v1618_v2 = vadd.f32 %v1617_v54, %v1366_v58 }
 0x185   :  { %v1659_v61 = vpop.f32.mrf.mxu2  ;;  %v1678_v60 = vpop.f32.mrf.mxu0 }
 0x186   :  { %v4279_v27 = vadd.f32 %v1656_v3, %v1618_v2 }
 0x188   :  { %v1908_v48 = vld [vmem:[#allocation1] sm:$0xff]  ;;  %v1909_v46 = vld [vmem:[#allocation1 + $0x9] sm:$0xff]  ;;  %v1910_v12 = vld [vmem:[#allocation1 + $0x12] sm:$0xff] }
 0x189   :  { %1911 = vst [vmem:[#allocation1] ss:$9 sm:$0xff] %v4135_v20  ;;  %v4514_v20 = vld [vmem:[#allocation31_spill] sm:$0xff] }
 0x18a   :  { %1912 = vst [vmem:[#allocation1 + $0x1] ss:$9 sm:$0xff] %v4137_v22 }
 0x18b   :  { %1913 = vst [vmem:[#allocation1 + $0x2] ss:$9 sm:$0xff] %v4163_v42  ;;  %v1620_v22 = vpop.f32.mrf.mxu3 }
 0x18c   :  { %1914 = vst [vmem:[#allocation1 + $0x3] ss:$9 sm:$0xff] %v4165_v21  ;;  %v1621_v42 = vadd.f32 %v1620_v22, %v4211_v31 }
 0x18d   :  { %2090 = vmatmul.bf16.gmra.mxu1 %v1908_v48  ;;  %2129 = vmatmul.bf16.gmra.mxu3 %v1909_v46  ;;  %1915 = vst [vmem:[#allocation1 + $0x4] ss:$9 sm:$0xff] %v4167_v10  ;;  %v1661_v21 = vpop.f32.mrf.mxu2  ;;  %v1371_v10 = vadd.f32 %v4515_v9, %v4221_v40  ;;  %v1680_v57 = vpop.f32.mrf.mxu0 }
 0x18e   :  { %2834 = vmatmul.msk.bf16.gmra.mxu2 %vm1244_vm11, %v1910_v12  ;;  %1916 = vst [vmem:[#allocation1 + $0x5] ss:$9 sm:$0xff] %v4157_v4  ;;  %v4286_v63 = vadd.f32 %v1659_v61, %v1621_v42  ;;  %v1681_v41 = vadd.f32 %v1680_v57, %v4270_v6 }
 0x18f   :  { %1917 = vst [vmem:[#allocation1 + $0x6] ss:$9 sm:$0xff] %v4159_v26  ;;  %v1336_v26 = vpop.f32.mrf.mxu1 }
 0x190   :  { %1918 = vst [vmem:[#allocation1 + $0x7] ss:$9 sm:$0xff] %v4514_v20  ;;  %v1337_v28 = vadd.f32 %v1336_v26, %v4242_v36 }
 0x192   :  { %v1376_v40 = vadd.f32 %v4185_v51, %v1337_v28 }
 0x193   :  { %v1622_v23 = vpop.f32.mrf.mxu3 }
 0x194   :  { %v1623_v32 = vadd.f32 %v1622_v23, %v1371_v10 }
 0x195   :  { %v1664_v31 = vpop.f32.mrf.mxu2  ;;  %v1683_v39 = vpop.f32.mrf.mxu0 }
 0x196   :  { %v4290_v4 = vadd.f32 %v1661_v21, %v1623_v32  ;;  %v1684_v2 = vadd.f32 %v1683_v39, %v4223_v45 }
 0x197   :  { %v1919_v15 = vld [vmem:[#allocation1] sm:$0xff]  ;;  %v1920_v16 = vld [vmem:[#allocation1 + $0x9] sm:$0xff]  ;;  %v1921_v7 = vld [vmem:[#allocation1 + $0x12] sm:$0xff] }
 0x19b   :  { %v1625_v19 = vpop.f32.mrf.mxu3 }
 0x19c   :  { %v1626_v18 = vadd.f32 %v1625_v19, %v4233_v5  ;;  %v1679_v5 = vadd.f32 %v1678_v60, %v4260_v53 }
 0x19d   :  { %2095 = vmatmul.bf16.gmra.mxu1 %v1919_v15  ;;  %2134 = vmatmul.bf16.gmra.mxu3 %v1920_v16  ;;  %v1666_v49 = vpop.f32.mrf.mxu2  ;;  %v1685_v44 = vpop.f32.mrf.mxu0 }
 0x19e   :  { %2835 = vmatmul.msk.bf16.gmra.mxu2 %vm1244_vm11, %v1921_v7  ;;  %v4295_v43 = vadd.f32 %v1664_v31, %v1626_v18  ;;  %v1686_v16 = vadd.f32 %v1685_v44, %v4229_v55  ;;  %vm2499_vm11 = vcmask 1046534  }
 0x1a3   :  { %v1627_v24 = vpop.f32.mrf.mxu3 }
 0x1a4   :  { %v1628_v29 = vadd.f32 %v1627_v24, %v1376_v40 }
 0x1a5   :  { %v1688_v48 = vpop.f32.mrf.mxu0 }
 0x1a6   :  { %v4298_v52 = vadd.f32 %v1666_v49, %v1628_v29 }
 0x1ad   :  { %v1690_v32 = vpop.f32.mrf.mxu0 }
 0x1ca   :  { %v2071_v56 = vpop.f32.mrf.mxu1 }
 0x1d0   :  { %v2110_v62 = vpop.f32.mrf.mxu3 }
 0x1d1   :  { %v2111_v50 = vadd.f32 %v2110_v62, %v2071_v56  ;;  %v2149_v59 = vpop.f32.mrf.mxu2 }
 0x1d2   :  { %v2073_v38 = vpop.f32.mrf.mxu1 }
 0x1d3   :  { %v2150_v36 = vadd.f32 %v2149_v59, %v2111_v50  ;;  %v1689_v50 = vadd.f32 %v1688_v48, %v4244_v13 }
 0x1d5   :  { %v2179_v37 = vadd.f32 %v2150_v36, %v1679_v5 }
 0x1d7   :  { %v2203_v8 = vrot.slane %v2179_v37, 2  ;;  %v2204_v51 = vrot.slane %v2179_v37, 4  ;;  %v2205_v11 = vrot.slane %v2179_v37, 6  ;;  %2239 = vst [vmem:[#allocation1] ss:$4 sm:$0xff] %v2179_v37  ;;  %v1693_v37 = vpop.f32.mrf.mxu0 }
 0x1d8   :  { %v2112_v30 = vpop.f32.mrf.mxu3 }
 0x1d9   :  { %2241 = vst [vmem:[#allocation1 + $0x1] ss:$4 sm:$0xff] %v2203_v8  ;;  %v2113_v14 = vadd.f32 %v2112_v30, %v2073_v38  ;;  %v2151_v17 = vpop.f32.mrf.mxu2 }
 0x1da   :  { %2243 = vst [vmem:[#allocation1 + $0x2] ss:$4 sm:$0xff] %v2204_v51  ;;  %v2076_v47 = vpop.f32.mrf.mxu1 }
 0x1db   :  { %2246 = vst [vmem:[#allocation1 + $0x20] ss:$4 sm:$0xff] %v2205_v11  ;;  %v2152_v35 = vadd.f32 %v2151_v17, %v2113_v14 }
 0x1dd   :  { %v2180_v1 = vadd.f32 %v2152_v35, %v1681_v41 }
 0x1df   :  { %v2206_v25 = vrot.slane %v2180_v1, 2  ;;  %v2207_v53 = vrot.slane %v2180_v1, 4  ;;  %v2208_v3 = vrot.slane %v2180_v1, 6  ;;  %2248 = vst [vmem:[#allocation1 + $0x21] ss:$4 sm:$0xff] %v2180_v1 }
 0x1e0   :  { %v2115_v33 = vpop.f32.mrf.mxu3 }
 0x1e1   :  { %2250 = vst [vmem:[#allocation1 + $0x22] ss:$4 sm:$0xff] %v2206_v25  ;;  %v2116_v46 = vadd.f32 %v2115_v33, %v2076_v47  ;;  %v2154_v12 = vpop.f32.mrf.mxu2  ;;  %v2244_v58 = vld.sshfl [vmem:[#allocation1] sm:$0xff pattern:$0x73625140] }
 0x1e2   :  { %v2078_v54 = vpop.f32.mrf.mxu1  ;;  %2252 = vst [vmem:[#allocation1] ss:$4 sm:$0xff] %v2207_v53  ;;  %v2324_v38 = vsel %vm4518_vm9, %v2244_v58, -inf  ;;  %vm4526_vm9 = vmmov %vm4468_vm0 }
 0x1e3   :  { %v2155_v61 = vadd.f32 %v2154_v12, %v2116_v46  ;;  %2253 = vst [vmem:[#allocation1 + $0x1] ss:$4 sm:$0xff] %v2208_v3  ;;  %v2325_v8 = vrot.slane %v2324_v38, 4  ;;  %v1691_v46 = vadd.f32 %v1690_v32, %v4254_v0 }
 0x1e5   :  { %v2181_v6 = vadd.f32 %v2155_v61, %v1684_v2  ;;  %v2326_v53 = vmax.f32 %v2324_v38, %v2325_v8 }
 0x1e7   :  { %v2209_v20 = vrot.slane %v2181_v6, 2  ;;  %v2210_v22 = vrot.slane %v2181_v6, 4  ;;  %v2211_v42 = vrot.slane %v2181_v6, 6  ;;  %2254 = vst [vmem:[#allocation1 + $0x2] ss:$4 sm:$0xff] %v2181_v6  ;;  %v2327_v6 = vrot.slane %v2326_v53, 2 }
 0x1e8   :  { %v2251_v21 = vld.sshfl [vmem:[#allocation1 + $0x20] sm:$0xff pattern:$0x73625140]  ;;  %v2117_v9 = vpop.f32.mrf.mxu3 }
 0x1e9   :  { %2256 = vst [vmem:[#allocation1 + $0x20] ss:$4 sm:$0xff] %v2209_v20  ;;  %v2118_v10 = vadd.f32 %v2117_v9, %v2078_v54  ;;  %v2156_v23 = vpop.f32.mrf.mxu2  ;;  %v2331_v45 = vsel %vm4516_vm5, %v2251_v21, -inf  ;;  %vm4524_vm5 = vmmov %vm4468_vm0 }
 0x1ea   :  { %2257 = vst [vmem:[#allocation1 + $0x21] ss:$4 sm:$0xff] %v2210_v22  ;;  %v2081_v15 = vpop.f32.mrf.mxu1  ;;  %v2332_v31 = vrot.slane %v2331_v45, 4 }
 0x1eb   :  { %2258 = vst [vmem:[#allocation1 + $0x22] ss:$4 sm:$0xff] %v2211_v42  ;;  %v2157_v7 = vadd.f32 %v2156_v23, %v2118_v10  ;;  %v1695_v42 = vpop.f32.mrf.mxu0 }
 0x1ec   :  { %v2333_v39 = vmax.f32 %v2331_v45, %v2332_v31  ;;  %v2328_v31 = vmax.f32 %v2326_v53, %v2327_v6 }
 0x1ed   :  { %v2182_v26 = vadd.f32 %v2157_v7, %v1686_v16 }
 0x1ee   :  { %v2255_v19 = vld.sshfl [vmem:[#allocation1] sm:$0xff pattern:$0x73625140]  ;;  %v2334_v51 = vrot.slane %v2333_v39, 2 }
 0x1ef   :  { %v2212_v18 = vrot.slane %v2182_v26, 2  ;;  %v2213_v28 = vrot.slane %v2182_v26, 4  ;;  %v2214_v40 = vrot.slane %v2182_v26, 6  ;;  %2260 = vst [vmem:[#allocation1] ss:$4 sm:$0xff] %v2182_v26  ;;  %v2338_v24 = vsel %vm4517_vm7, %v2255_v19, -inf  ;;  %vm4525_vm7 = vmmov %vm4468_vm0 }
 0x1f0   :  { %v2120_v29 = vpop.f32.mrf.mxu3  ;;  %v2339_v49 = vrot.slane %v2338_v24, 4  ;;  %v2335_v3 = vmax.f32 %v2333_v39, %v2334_v51 }
 0x1f1   :  { %v2121_v60 = vadd.f32 %v2120_v29, %v2081_v15  ;;  %v2159_v57 = vpop.f32.mrf.mxu2  ;;  %2261 = vst [vmem:[#allocation1 + $0x1] ss:$4 sm:$0xff] %v2212_v18 }
 0x1f2   :  { %v2259_v55 = vld.sshfl [vmem:[#allocation1 + $0x20] sm:$0xff pattern:$0x73625140]  ;;  %v2083_v56 = vpop.f32.mrf.mxu1  ;;  %2262 = vst [vmem:[#allocation1 + $0x2] ss:$4 sm:$0xff] %v2213_v28  ;;  %v2340_v62 = vmax.f32 %v2338_v24, %v2339_v49  ;;  %v2336_v20 = vrot.slane %v2335_v3, 1  ;;  %v1694_v24 = vadd.f32 %v1693_v37, %v4267_v34 }
 0x1f3   :  { %2264 = vst [vmem:[#allocation1 + $0x20] ss:$4 sm:$0xff] %v2214_v40  ;;  %v2160_v59 = vadd.f32 %v2159_v57, %v2121_v60  ;;  %v2345_v5 = vsel %vm4519_vm12, %v2259_v55, -inf  ;;  %v4316_v57 = vld [vmem:[%s4371_s2] ss:$0 sm:$0xff]  ;;  %vm4527_vm12 = vmmov %vm4468_vm0  ;;  %s2993_s2 = smov [#allocation7]  }
 0x1f4   :  { %v2346_v36 = vrot.slane %v2345_v5, 4  ;;  %v2341_v11 = vrot.slane %v2340_v62, 2  ;;  %v2337_v18 = vmax.f32 %v2335_v3, %v2336_v20  ;;  %s2526_s26 = sshll.u32 %s2993_s2, 4  ;;  %s2527_s26 = int_to_ptr.vmem [resolvable:$true] %s2526_s26 }
 0x1f5   :  { %v2183_v44 = vadd.f32 %v2160_v59, %v1689_v50 }
 0x1f6   :  { %v2347_v41 = vmax.f32 %v2345_v5, %v2346_v36  ;;  %v2342_v33 = vmax.f32 %v2340_v62, %v2341_v11  ;;  %v2329_v62 = vrot.slane %v2328_v31, 1  ;;  %v2441_v59 = vadd.f32 %v4316_v57, %v2337_v18 }
 0x1f7   :  { %v2215_v30 = vrot.slane %v2183_v44, 2  ;;  %v2216_v14 = vrot.slane %v2183_v44, 4  ;;  %v2217_v17 = vrot.slane %v2183_v44, 6  ;;  %2265 = vst [vmem:[#allocation1 + $0x21] ss:$4 sm:$0xff] %v2183_v44 }
 0x1f8   :  { %v2122_v47 = vpop.f32.mrf.mxu3  ;;  %v2348_v54 = vrot.slane %v2347_v41, 2  ;;  %v2343_v22 = vrot.slane %v2342_v33, 1 }
 0x1f9   :  { %2266 = vst [vmem:[#allocation1 + $0x22] ss:$4 sm:$0xff] %v2215_v30  ;;  %v2123_v13 = vadd.f32 %v2122_v47, %v2083_v56  ;;  %v2161_v35 = vpop.f32.mrf.mxu2  ;;  %v2263_v1 = vld.sshfl [vmem:[#allocation1] sm:$0xff pattern:$0x73625140]  ;;  %v1698_v30 = vpop.f32.mrf.mxu0 }
 0x1fa   :  { %v2086_v25 = vpop.f32.mrf.mxu1  ;;  %2268 = vst [vmem:[#allocation1] ss:$4 sm:$0xff] %v2216_v14  ;;  %v2352_v48 = vsel %vm4520_vm13, %v2263_v1, -inf  ;;  %v2349_v7 = vmax.f32 %v2347_v41, %v2348_v54  ;;  %v2344_v28 = vmax.f32 %v2342_v33, %v2343_v22  ;;  %v1696_v41 = vadd.f32 %v1695_v42, %v4279_v27  ;;  %vm4528_vm13 = vmmov %vm4468_vm0 }
 0x1fb   :  { %v2162_v12 = vadd.f32 %v2161_v35, %v2123_v13  ;;  %2269 = vst [vmem:[#allocation1 + $0x1] ss:$4 sm:$0xff] %v2217_v17  ;;  %v2353_v58 = vrot.slane %v2352_v48, 4  ;;  %v2330_v1 = vmax.f32 %v2328_v31, %v2329_v62 }
 0x1fc   :  { %v2350_v49 = vrot.slane %v2349_v7, 1  ;;  %v2442_v38 = vadd.f32 %v4316_v57, %v2344_v28 }
 0x1fd   :  { %v2184_v2 = vadd.f32 %v2162_v12, %v1691_v46  ;;  %v2354_v61 = vmax.f32 %v2352_v48, %v2353_v58  ;;  %v2457_v48 = vmax.f32 %v2441_v59, 0.0  ;;  %v2440_v22 = vadd.f32 %v4316_v57, %v2330_v1 }
 0x1fe   :  { %v2351_v8 = vmax.f32 %v2349_v7, %v2350_v49  ;;  %v2458_v46 = vmax.f32 %v2442_v38, 0.0 }
 0x1ff   :  { %v2218_v21 = vrot.slane %v2184_v2, 2  ;;  %v2219_v9 = vrot.slane %v2184_v2, 4  ;;  %v2220_v10 = vrot.slane %v2184_v2, 6  ;;  %2270 = vst [vmem:[#allocation1 + $0x2] ss:$4 sm:$0xff] %v2184_v2  ;;  %v2355_v23 = vrot.slane %v2354_v61, 2 }
 0x200   :  { %v2267_v15 = vld.sshfl [vmem:[#allocation1 + $0x20] sm:$0xff pattern:$0x73625140]  ;;  %v2125_v16 = vpop.f32.mrf.mxu3  ;;  %v2443_v2 = vadd.f32 %v4316_v57, %v2351_v8 }
 0x201   :  { %2272 = vst [vmem:[#allocation1 + $0x20] ss:$4 sm:$0xff] %v2218_v21  ;;  %v2126_v0 = vadd.f32 %v2125_v16, %v2086_v25  ;;  %v2164_v32 = vpop.f32.mrf.mxu2  ;;  %v2356_v45 = vmax.f32 %v2354_v61, %v2355_v23  ;;  %v2359_v26 = vsel %vm4521_vm15, %v2267_v15, -inf  ;;  %v2488_v23 = vrot.slane %v2457_v48, 7  ;;  %v1700_v49 = vpop.f32.mrf.mxu0  ;;  %vm4529_vm15 = vmmov %vm4468_vm0 }
 0x202   :  { %2273 = vst [vmem:[#allocation1 + $0x21] ss:$4 sm:$0xff] %v2219_v9  ;;  %v2088_v19 = vpop.f32.mrf.mxu1  ;;  %v2360_v40 = vrot.slane %v2359_v26, 4 }
 0x203   :  { %2274 = vst [vmem:[#allocation1 + $0x22] ss:$4 sm:$0xff] %v2220_v10  ;;  %v2165_v29 = vadd.f32 %v2164_v32, %v2126_v0  ;;  %v2357_v56 = vrot.slane %v2356_v45, 1  ;;  %v2459_v0 = vmax.f32 %v2443_v2, 0.0  ;;  %v2490_v32 = vrot.slane %v2458_v46, 6 }
 0x204   :  { %v2361_v60 = vmax.f32 %v2359_v26, %v2360_v40  ;;  %v2456_v40 = vmax.f32 %v2440_v22, 0.0 }
 0x205   :  { %v2185_v55 = vadd.f32 %v2165_v29, %v1694_v24  ;;  %v2358_v47 = vmax.f32 %v2356_v45, %v2357_v56  ;;  %v1699_v29 = vadd.f32 %v1698_v30, %v4286_v63 }
 0x206   :  { %v2271_v39 = vld.sshfl [vmem:[#allocation1] sm:$0xff pattern:$0x73625140]  ;;  %v2362_v50 = vrot.slane %v2361_v60, 2  ;;  %v2489_v62 = vsel %vm170_vm3, %v2488_v23, %v2456_v40 }
 0x207   :  { %v2221_v5 = vrot.slane %v2185_v55, 2  ;;  %v2222_v34 = vrot.slane %v2185_v55, 4  ;;  %v2223_v36 = vrot.slane %v2185_v55, 6  ;;  %2276 = vst [vmem:[#allocation1] ss:$4 sm:$0xff] %v2185_v55  ;;  %v2366_v37 = vsel %vm4522_vm10, %v2271_v39, -inf  ;;  %vm4530_vm10 = vmmov %vm4468_vm0 }
 0x208   :  { %v2127_v44 = vpop.f32.mrf.mxu3  ;;  %v2363_v51 = vmax.f32 %v2361_v60, %v2362_v50  ;;  %v2367_v11 = vrot.slane %v2366_v37, 4  ;;  %v2444_v27 = vadd.f32 %v4316_v57, %v2358_v47  ;;  %v2492_v50 = vrot.slane %v2459_v0, 5 }
 0x209   :  { %v2128_v14 = vadd.f32 %v2127_v44, %v2088_v19  ;;  %v2166_v17 = vpop.f32.mrf.mxu2  ;;  %2277 = vst [vmem:[#allocation1 + $0x1] ss:$4 sm:$0xff] %v2221_v5  ;;  %v2491_v38 = vsel %vm164_vm2, %v2490_v32, %v2489_v62  ;;  %v1703_v46 = vpop.f32.mrf.mxu0 }
 0x20a   :  { %v2275_v13 = vld.sshfl [vmem:[#allocation1 + $0x20] sm:$0xff pattern:$0x73625140]  ;;  %v2091_v35 = vpop.f32.mrf.mxu1  ;;  %2278 = vst [vmem:[#allocation1 + $0x2] ss:$4 sm:$0xff] %v2222_v34  ;;  %v2364_v25 = vrot.slane %v2363_v51, 1  ;;  %v2368_v53 = vmax.f32 %v2366_v37, %v2367_v11 }
 0x20b   :  { %2280 = vst [vmem:[#allocation1 + $0x20] ss:$4 sm:$0xff] %v2223_v36  ;;  %v2167_v3 = vadd.f32 %v2166_v17, %v2128_v14  ;;  %v2373_v33 = vsel %vm4523_vm14, %v2275_v13, -inf  ;;  %v2460_v31 = vmax.f32 %v2444_v27, 0.0  ;;  %v2493_v14 = vsel %vm172_vm4, %v2492_v50, %v2491_v38 }
 0x20c   :  { %v2365_v12 = vmax.f32 %v2363_v51, %v2364_v25  ;;  %v2369_v58 = vrot.slane %v2368_v53, 2  ;;  %v2374_v54 = vrot.slane %v2373_v33, 4 }
 0x20d   :  { %v2186_v61 = vadd.f32 %v2167_v3, %v1696_v41  ;;  %v2494_v5 = vrot.slane %v2460_v31, 4 }
 0x20e   :  { %v2370_v6 = vmax.f32 %v2368_v53, %v2369_v58  ;;  %v2375_v20 = vmax.f32 %v2373_v33, %v2374_v54  ;;  %v2445_v42 = vadd.f32 %v4316_v57, %v2365_v12 }
 0x20f   :  { %v2224_v21 = vrot.slane %v2186_v61, 2  ;;  %v2225_v9 = vrot.slane %v2186_v61, 4  ;;  %v2226_v10 = vrot.slane %v2186_v61, 6  ;;  %2281 = vst [vmem:[#allocation1 + $0x21] ss:$4 sm:$0xff] %v2186_v61  ;;  %v2495_v13 = vsel %vm179_vm8, %v2494_v5, %v2493_v14 }
 0x210   :  { %v2130_v15 = vpop.f32.mrf.mxu3  ;;  %v2371_v16 = vrot.slane %v2370_v6, 1  ;;  %v2376_v7 = vrot.slane %v2375_v20, 2  ;;  %v2461_v24 = vmax.f32 %v2445_v42, 0.0 }
 0x211   :  { %2282 = vst [vmem:[#allocation1 + $0x22] ss:$4 sm:$0xff] %v2224_v21  ;;  %v2131_v45 = vadd.f32 %v2130_v15, %v2091_v35  ;;  %v2169_v26 = vpop.f32.mrf.mxu2  ;;  %v4327_v19 = vld.sshfl [vmem:[#allocation1] sm:$0xff pattern:$0x73625140]  ;;  %v1701_v35 = vadd.f32 %v1700_v49, %v4290_v4  ;;  %v1704_v15 = vadd.f32 %v1703_v46, %v4295_v43 }
 0x212   :  { %2284 = vst [vmem:[#allocation1] ss:$4 sm:$0xff] %v2225_v9  ;;  %v2372_v18 = vmax.f32 %v2370_v6, %v2371_v16  ;;  %v2377_v28 = vmax.f32 %v2375_v20, %v2376_v7  ;;  %v2093_v55 = vpop.f32.mrf.mxu1  ;;  %v2496_v37 = vrot.slane %v2461_v24, 3  ;;  %v2380_v7 = vsel %vm4525_vm7, %v4327_v19, -inf }
 0x213   :  { %v2170_v60 = vadd.f32 %v2169_v26, %v2131_v45  ;;  %2285 = vst [vmem:[#allocation1 + $0x1] ss:$4 sm:$0xff] %v2226_v10  ;;  %v2381_v31 = vrot.slane %v2380_v7, 4 }
 0x214   :  { %v2378_v56 = vrot.slane %v2377_v28, 1  ;;  %v2446_v39 = vadd.f32 %v4316_v57, %v2372_v18  ;;  %v2497_v25 = vsel %vm479_vm6, %v2496_v37, %v2495_v13 }
 0x215   :  { %v2187_v59 = vadd.f32 %v2170_v60, %v1699_v29  ;;  %v2382_v62 = vmax.f32 %v2380_v7, %v2381_v31 }
 0x216   :  { %v2379_v34 = vmax.f32 %v2377_v28, %v2378_v56  ;;  %v2462_v36 = vmax.f32 %v2446_v39, 0.0  ;;  %v1705_v28 = vpop.f32.mrf.mxu0 }
 0x217   :  { %v2227_v44 = vrot.slane %v2187_v59, 2  ;;  %v2228_v8 = vrot.slane %v2187_v59, 4  ;;  %v2229_v63 = vrot.slane %v2187_v59, 6  ;;  %2286 = vst [vmem:[#allocation1 + $0x2] ss:$4 sm:$0xff] %v2187_v59  ;;  %v1706_v38 = vadd.f32 %v1705_v28, %v4298_v52 }
 0x218   :  { %v2283_v51 = vld.sshfl [vmem:[#allocation1 + $0x20] sm:$0xff pattern:$0x73625140]  ;;  %v2132_v11 = vpop.f32.mrf.mxu3  ;;  %v2447_v30 = vadd.f32 %v4316_v57, %v2379_v34  ;;  %v2498_v17 = vrot.slane %v2462_v36, 2 }
 0x219   :  { %2288 = vst [vmem:[#allocation1 + $0x20] ss:$4 sm:$0xff] %v2227_v44  ;;  %v2133_v47 = vadd.f32 %v2132_v11, %v2093_v55  ;;  %v2171_v41 = vpop.f32.mrf.mxu2  ;;  %v2387_v3 = vsel %vm4468_vm0, %v2283_v51, -inf }
 0x21a   :  { %2289 = vst [vmem:[#allocation1 + $0x21] ss:$4 sm:$0xff] %v2228_v8  ;;  %v2463_v1 = vmax.f32 %v2447_v30, 0.0  ;;  %v2500_v33 = vsel %vm2499_vm11, %v2498_v17, %v2497_v25  ;;  %v2096_v58 = vpop.f32.mrf.mxu1  ;;  %v2388_v2 = vrot.slane %v2387_v3, 4 }
 0x21b   :  { %2290 = vst [vmem:[#allocation1 + $0x22] ss:$4 sm:$0xff] %v2229_v63  ;;  %v2172_v53 = vadd.f32 %v2171_v41, %v2133_v47  ;;  %v2383_v63 = vrot.slane %v2382_v62, 2 }
 0x21c   :  { %v2501_v48 = vrot.slane %v2463_v1, 1  ;;  %v2389_v23 = vmax.f32 %v2387_v3, %v2388_v2 }
 0x21d   :  { %v2188_v12 = vadd.f32 %v2172_v53, %v1701_v35  ;;  %v2384_v1 = vmax.f32 %v2382_v62, %v2383_v63 }
 0x21e   :  { %v2287_v54 = vld.sshfl [vmem:[#allocation1] sm:$0xff pattern:$0x73625140]  ;;  %v2503_v61 = vsel %vm2502_vm1, %v2501_v48, %v2500_v33  ;;  %v2390_v18 = vrot.slane %v2389_v23, 2 }
 0x21f   :  { %v2230_v4 = vrot.slane %v2188_v12, 2  ;;  %v2231_v27 = vrot.slane %v2188_v12, 4  ;;  %v2232_v6 = vrot.slane %v2188_v12, 6  ;;  %2292 = vst [vmem:[#allocation1] ss:$4 sm:$0xff] %v2188_v12  ;;  %v2394_v20 = vsel %vm4524_vm5, %v2287_v54, -inf }
 0x220   :  { %v2135_v22 = vpop.f32.mrf.mxu3  ;;  %2520 = vst [vmem:[#allocation7] sm:$0xff] %v2503_v61  ;;  %v2395_v9 = vrot.slane %v2394_v20, 4  ;;  %v2391_v50 = vmax.f32 %v2389_v23, %v2390_v18 }
 0x221   :  { %v2136_v42 = vadd.f32 %v2135_v22, %v2096_v58  ;;  %v2174_v21 = vpop.f32.mrf.mxu2  ;;  %2293 = vst [vmem:[#allocation1 + $0x1] ss:$4 sm:$0xff] %v2230_v4  ;;  %v2385_v58 = vrot.slane %v2384_v1, 1 }
 0x222   :  { %v2291_v10 = vld.sshfl [vmem:[#allocation1 + $0x20] sm:$0xff pattern:$0x73625140]  ;;  %2294 = vst [vmem:[#allocation1 + $0x2] ss:$4 sm:$0xff] %v2231_v27  ;;  %v2396_v26 = vmax.f32 %v2394_v20, %v2395_v9  ;;  %v2098_v49 = vpop.f32.mrf.mxu1  ;;  %v2392_v51 = vrot.slane %v2391_v50, 1 }
 0x223   :  { %v2175_v16 = vadd.f32 %v2174_v21, %v2136_v42  ;;  %2296 = vst [vmem:[#allocation1 + $0x20] ss:$4 sm:$0xff] %v2232_v6  ;;  %v2401_v0 = vsel %vm4526_vm9, %v2291_v10, -inf  ;;  %v2386_v21 = vmax.f32 %v2384_v1, %v2385_v58 }
 0x224   :  { %v2402_v32 = vrot.slane %v2401_v0, 4  ;;  %v2397_v39 = vrot.slane %v2396_v26, 2  ;;  %v2393_v53 = vmax.f32 %v2391_v50, %v2392_v51 }
 0x225   :  { %v2189_v45 = vadd.f32 %v2175_v16, %v1704_v15  ;;  %v2448_v28 = vadd.f32 %v4316_v57, %v2386_v21 }
 0x226   :  { %v2403_v43 = vmax.f32 %v2401_v0, %v2402_v32  ;;  %v2398_v44 = vmax.f32 %v2396_v26, %v2397_v39  ;;  %v2449_v61 = vadd.f32 %v4316_v57, %v2393_v53 }
 0x227   :  { %v2233_v40 = vrot.slane %v2189_v45, 2  ;;  %v2234_v24 = vrot.slane %v2189_v45, 4  ;;  %v2235_v29 = vrot.slane %v2189_v45, 6  ;;  %2297 = vst [vmem:[#allocation1 + $0x21] ss:$4 sm:$0xff] %v2189_v45 }
 0x228   :  { %v2137_v60 = vpop.f32.mrf.mxu3  ;;  %v2404_v36 = vrot.slane %v2403_v43, 2  ;;  %v2399_v13 = vrot.slane %v2398_v44, 1  ;;  %v2465_v15 = vmax.f32 %v2449_v61, 0.0 }
 0x229   :  { %v2138_v55 = vadd.f32 %v2137_v60, %v2098_v49  ;;  %v2295_v56 = vld.sshfl [vmem:[#allocation1] sm:$0xff pattern:$0x73625140]  ;;  %2298 = vst [vmem:[#allocation1 + $0x22] ss:$4 sm:$0xff] %v2233_v40  ;;  %v2176_v19 = vpop.f32.mrf.mxu2 }
 0x22a   :  { %2300 = vst [vmem:[#allocation1] ss:$4 sm:$0xff] %v2234_v24  ;;  %v2408_v59 = vsel %vm4527_vm12, %v2295_v56, -inf  ;;  %v2405_v41 = vmax.f32 %v2403_v43, %v2404_v36  ;;  %v2400_v48 = vmax.f32 %v2398_v44, %v2399_v13  ;;  %v2504_v60 = vrot.slane %v2465_v15, 7 }
 0x22b   :  { %v2177_v5 = vadd.f32 %v2176_v19, %v2138_v55  ;;  %2301 = vst [vmem:[#allocation1 + $0x1] ss:$4 sm:$0xff] %v2235_v29  ;;  %v2409_v34 = vrot.slane %v2408_v59, 4  ;;  %v2464_v19 = vmax.f32 %v2448_v28, 0.0 }
 0x22c   :  { %v2406_v3 = vrot.slane %v2405_v41, 1  ;;  %v2450_v22 = vadd.f32 %v4316_v57, %v2400_v48 }
 0x22d   :  { %v2190_v37 = vadd.f32 %v2177_v5, %v1706_v38  ;;  %v2410_v8 = vmax.f32 %v2408_v59, %v2409_v34  ;;  %v2505_v38 = vsel %vm170_vm3, %v2504_v60, %v2464_v19 }
 0x22e   :  { %v2407_v4 = vmax.f32 %v2405_v41, %v2406_v3  ;;  %v2466_v26 = vmax.f32 %v2450_v22, 0.0 }
 0x22f   :  { %v2236_v11 = vrot.slane %v2190_v37, 2  ;;  %v2237_v30 = vrot.slane %v2190_v37, 4  ;;  %v2238_v14 = vrot.slane %v2190_v37, 6  ;;  %2302 = vst [vmem:[#allocation1 + $0x2] ss:$4 sm:$0xff] %v2190_v37  ;;  %v2411_v17 = vrot.slane %v2410_v8, 2 }
 0x230   :  { %v2299_v47 = vld.sshfl [vmem:[#allocation1 + $0x20] sm:$0xff pattern:$0x73625140]  ;;  %v2451_v32 = vadd.f32 %v4316_v57, %v2407_v4  ;;  %v2506_v55 = vrot.slane %v2466_v26, 6 }
 0x231   :  { %2304 = vst [vmem:[#allocation1 + $0x20] ss:$4 sm:$0xff] %v2236_v11  ;;  %v2412_v35 = vmax.f32 %v2410_v8, %v2411_v17  ;;  %v2415_v52 = vsel %vm4528_vm13, %v2299_v47, -inf }
 0x232   :  { %2305 = vst [vmem:[#allocation1 + $0x21] ss:$4 sm:$0xff] %v2237_v30  ;;  %v2416_v25 = vrot.slane %v2415_v52, 4  ;;  %v2467_v49 = vmax.f32 %v2451_v32, 0.0  ;;  %v2507_v34 = vsel %vm164_vm2, %v2506_v55, %v2505_v38 }
 0x233   :  { %2306 = vst [vmem:[#allocation1 + $0x22] ss:$4 sm:$0xff] %v2238_v14  ;;  %v2413_v46 = vrot.slane %v2412_v35, 1 }
 0x234   :  { %v2417_v33 = vmax.f32 %v2415_v52, %v2416_v25  ;;  %v2508_v5 = vrot.slane %v2467_v49, 5 }
 0x235   :  { %v2414_v20 = vmax.f32 %v2412_v35, %v2413_v46 }
 0x236   :  { %v2303_v12 = vld.sshfl [vmem:[#allocation1] sm:$0xff pattern:$0x73625140]  ;;  %v2418_v54 = vrot.slane %v2417_v33, 2  ;;  %v2509_v51 = vsel %vm172_vm4, %v2508_v5, %v2507_v34 }
 0x237   :  { %v2422_v2 = vsel %vm4529_vm15, %v2303_v12, -inf  ;;  %v2452_v45 = vadd.f32 %v4316_v57, %v2414_v20 }
 0x238   :  { %v2419_v27 = vmax.f32 %v2417_v33, %v2418_v54  ;;  %v2423_v6 = vrot.slane %v2422_v2, 4 }
 0x239   :  { %v2468_v43 = vmax.f32 %v2452_v45, 0.0 }
 0x23a   :  { %v2307_v42 = vld.sshfl [vmem:[#allocation1 + $0x20] sm:$0xff pattern:$0x73625140]  ;;  %v2420_v9 = vrot.slane %v2419_v27, 1  ;;  %v2424_v10 = vmax.f32 %v2422_v2, %v2423_v6 }
 0x23b   :  { %v2429_v23 = vsel %vm4530_vm10, %v2307_v42, -inf  ;;  %v2510_v36 = vrot.slane %v2468_v43, 4 }
 0x23c   :  { %v2421_v16 = vmax.f32 %v2419_v27, %v2420_v9  ;;  %v2425_v7 = vrot.slane %v2424_v10, 2  ;;  %v2430_v0 = vrot.slane %v2429_v23, 4 }
 0x23d   :  { %v2511_v30 = vsel %vm179_vm8, %v2510_v36, %v2509_v51 }
 0x23e   :  { %v2426_v31 = vmax.f32 %v2424_v10, %v2425_v7  ;;  %v2431_v18 = vmax.f32 %v2429_v23, %v2430_v0  ;;  %v2453_v40 = vadd.f32 %v4316_v57, %v2421_v16 }
 0x240   :  { %v2427_v24 = vrot.slane %v2426_v31, 1  ;;  %v2432_v29 = vrot.slane %v2431_v18, 2  ;;  %v2469_v62 = vmax.f32 %v2453_v40, 0.0 }
 0x242   :  { %v2428_v56 = vmax.f32 %v2426_v31, %v2427_v24  ;;  %v2433_v39 = vmax.f32 %v2431_v18, %v2432_v29  ;;  %v2512_v8 = vrot.slane %v2469_v62, 3 }
 0x244   :  { %v2434_v50 = vrot.slane %v2433_v39, 1  ;;  %v2454_v59 = vadd.f32 %v4316_v57, %v2428_v56  ;;  %v2513_v17 = vsel %vm479_vm6, %v2512_v8, %v2511_v30 }
 0x246   :  { %v2435_v37 = vmax.f32 %v2433_v39, %v2434_v50  ;;  %v2470_v44 = vmax.f32 %v2454_v59, 0.0 }
 0x248   :  { %v2455_v63 = vadd.f32 %v4316_v57, %v2435_v37  ;;  %v2514_v11 = vrot.slane %v2470_v44, 2 }
 0x24a   :  { %v2471_v14 = vmax.f32 %v2455_v63, 0.0  ;;  %v2515_v47 = vsel %vm2499_vm11, %v2514_v11, %v2513_v17 }
 0x24c   :  { %v2516_v41 = vrot.slane %v2471_v14, 1 }
 0x24e   :  { %v2517_v57 = vsel %vm2502_vm1, %v2516_v41, %v2515_v47 }
 0x24f   :  { %2521 = vst [vmem:[#allocation7 + $0x8] sm:$0xff] %v2517_v57 }
 0x250   :  { %2534 = dma.vmem_to_hbm [thread:$0]  %s2527_s26, 256, %s2529_s29, [#allocation4], %s2994_s30, %s2994_s30, %s2995_s4  }
 0x251   :  { %2985 = dma.done.wait [#allocation4], 256  }
 0x252   :  { %2986 = vsyncadd [#allocation4], 4294967040 }
 0x253   :  { %2539 = vsyncpa [#allocation3], 1 }
 0x254   :  { %2540 = vsyncpa [#allocation6], 1 }
 0x255   :  { %2541 = vsyncpa [#allocation4], 1 }

</bundles_post_ra>
